<compile_context>
chip_gen: v7x
topology: tpu7x:2x2x1
jax: 0.10.0
libtpu: 0.0.40
codegen_flags: <defaults>
</compile_context>

<pallas_src>
import functools
import math

import jax
import jax.numpy as jnp
from jax import lax
from jax.experimental import pallas as pl
from jax.experimental.pallas import tpu as pltpu

NEG_INF = -1e30   # finite "-inf" bias for padded vocab columns (exp -> 0, no NaNs)


# ----------------------------------------------------------------------------
# Generation-aware VMEM budget / tile caps.
#   v5e / v6e: 128 MiB physical VMEM -> ~100 MB scoped budget, bigger tiles.
#   v7x (or unknown): 64 MiB per TensorCore -> conservative 48 MB budget.
# ----------------------------------------------------------------------------
def _detect_vmem_budget():
    cap = None
    try:
        info = pltpu.get_tpu_info()
        cap = getattr(info, "vmem_capacity_bytes", None)
    except Exception:
        cap = None
    if not cap or cap <= 64 * 1024 * 1024:
        return 48 * 1024 * 1024          # safe everywhere (incl. v7x / unknown)
    return 100 * 1024 * 1024             # v5e / v6e


VMEM_LIMIT = _detect_vmem_budget()
_BIG_VMEM = VMEM_LIMIT > 64 * 1024 * 1024
TM_CAP = 512 if _BIG_VMEM else 256        # row tile, hoisted input projection
TK_CAP = 512                              # contraction tile
TN_GEMM_CAP = 512                         # col tile, hoisted input projection
TN_POOL_CAP = 1024 if _BIG_VMEM else 512  # row tile, vocab GEMM / softmax
TV_CAP = 1024 if _BIG_VMEM else 512       # vocab tile
BB_CAP = 256                              # batch block cap in the recurrence
TIME_BLOCK_CAP = 32 if _BIG_VMEM else 16  # timesteps per recurrence grid step


def _round_up(x, m):
    return ((x + m - 1) // m) * m


def _pick_tile(n, max_tile, step):
    """Largest multiple of `step` (falls back to 8 / 1 if n isn't a multiple of
    `step`) that is <= max_tile and divides n."""
    if n % step != 0:
        step = 8 if n % 8 == 0 else 1
    t = min(n, max_tile)
    t -= t % step
    if t <= 0:
        t = step
    while n % t != 0:
        t -= step
    return t


# ----------------------------------------------------------------------------
# Kernel 1: tiled matmul + bias (hoisted, time-independent input projection).
#   out = x @ w_t + b   with f32 accumulation, bf16 operands.
# ----------------------------------------------------------------------------
def _matmul_bias_onepass_kernel(x_ref, w_ref, b_ref, o_ref):
    # Single K block: no scratch accumulator, no acc->out copy.
    o_ref[...] = (jnp.dot(x_ref[...], w_ref[...],
                          preferred_element_type=jnp.float32)
                  + b_ref[...]).astype(o_ref.dtype)


def _matmul_bias_accout_kernel(x_ref, w_ref, b_ref, o_ref):
    # f32 output: accumulate directly into the resident output block (no scratch).
    k = pl.program_id(2)

    @pl.when(k == 0)
    def _():
        o_ref[...] = jnp.zeros(o_ref.shape, o_ref.dtype)

    o_ref[...] += jnp.dot(x_ref[...], w_ref[...],
                          preferred_element_type=jnp.float32)

    @pl.when(k == pl.num_programs(2) - 1)
    def _():
        o_ref[...] += b_ref[...]


def _matmul_bias_scratch_kernel(x_ref, w_ref, b_ref, o_ref, acc_ref):
    # Narrow (bf16) output with multiple K blocks: accumulate in f32 scratch.
    k = pl.program_id(2)

    @pl.when(k == 0)
    def _():
        acc_ref[...] = jnp.zeros(acc_ref.shape, acc_ref.dtype)

    acc_ref[...] += jnp.dot(x_ref[...], w_ref[...],
                            preferred_element_type=jnp.float32)

    @pl.when(k == pl.num_programs(2) - 1)
    def _():
        o_ref[...] = (acc_ref[...] + b_ref[...]).astype(o_ref.dtype)


def matmul_bias(x, w_t, b, out_dtype=jnp.float32):
    """x: (M, K) bf16, w_t: (K, N) bf16, b: (1, N) f32 -> (M, N) out_dtype."""
    M, K = x.shape
    N = w_t.shape[1]
    tm = _pick_tile(M, TM_CAP, 16)       # 16-row tiles: native bf16 sublane packing
    tk = _pick_tile(K, TK_CAP, 128)
    tn = _pick_tile(N, TN_GEMM_CAP, 128)
    nk = K // tk

    if nk == 1:
        kernel, scratch = _matmul_bias_onepass_kernel, []
    elif out_dtype == jnp.float32:
        kernel, scratch = _matmul_bias_accout_kernel, []
    else:
        kernel, scratch = (_matmul_bias_scratch_kernel,
                           [pltpu.VMEM((tm, tn), jnp.float32)])

    return pl.pallas_call(
        kernel,
        out_shape=jax.ShapeDtypeStruct((M, N), out_dtype),
        grid_spec=pltpu.PrefetchScalarGridSpec(
            num_scalar_prefetch=0,
            grid=(M // tm, N // tn, nk),
            in_specs=[
                pl.BlockSpec((tm, tk), lambda i, j, k: (i, k)),
                pl.BlockSpec((tk, tn), lambda i, j, k: (k, j)),
                pl.BlockSpec((1, tn), lambda i, j, k: (0, j)),
            ],
            out_specs=pl.BlockSpec((tm, tn), lambda i, j, k: (i, j)),
            scratch_shapes=scratch,
        ),
        compiler_params=pltpu.CompilerParams(
            dimension_semantics=("parallel", "parallel", "arbitrary"),
            vmem_limit_bytes=VMEM_LIMIT),
    )(x, w_t, b)


# ----------------------------------------------------------------------------
# Kernel 2: Elman recurrence with the input projection already folded in:
#   h_t = tanh(xp_t + h_{t-1} @ W_hh^T)
# grid = (batch_blocks [parallel], time_blocks [arbitrary; MUST stay innermost]);
# hidden state carried in bf16 VMEM scratch (the MXU operand dtype).
# ----------------------------------------------------------------------------
def _rnn_recur_kernel(xp_ref, h0_ref, whh_ref, y_ref, h_sc, *, time_block):
    t = pl.program_id(1)

    @pl.when(t == 0)
    def _():
        h_sc[...] = h0_ref[...].astype(h_sc.dtype)

    def step(i, carry):
        h = h_sc[...]                                           # (bb, Hp) bf16
        pre = (xp_ref[i].astype(jnp.float32)
               + jnp.dot(h, whh_ref[...], preferred_element_type=jnp.float32))
        h_new = jnp.tanh(pre).astype(h_sc.dtype)                # one cast on the carry path
        h_sc[...] = h_new
        y_ref[i] = h_new
        return carry

    lax.fori_loop(0, time_block, step, 0, unroll=True)


def rnn_layer(xp, h0, w_hh_t, *, time_block):
    """xp: (Tp, Bp, Hp) bf16 precomputed input proj; h0: (Bp, Hp) f32;
       w_hh_t: (Hp, Hp) bf16.  Returns y: (Tp, Bp, Hp) bf16 (y_t == h_t)."""
    Tp, Bp, Hp = xp.shape

    bb = _pick_tile(Bp, BB_CAP, 8)
    if not _BIG_VMEM:
        # likely v7x (2 TensorCores / chip): try to give each core a batch block
        while Bp // bb < 2 and bb > 8:
            bb = _pick_tile(Bp, bb // 2, 8)

    # Crude VMEM fit: xp + y double-buffered (bf16), W_hh single-buffered, h carry.
    def _est(bb_):
        return (2 * 2 * time_block * bb_ * Hp * 2 + Hp * Hp * 2 + bb_ * Hp * 2)
    while _est(bb) > int(0.75 * VMEM_LIMIT) and bb > 8:
        bb = _pick_tile(Bp, bb // 2, 8)

    kernel = functools.partial(_rnn_recur_kernel, time_block=time_block)
    return pl.pallas_call(
        kernel,
        out_shape=jax.ShapeDtypeStruct((Tp, Bp, Hp), jnp.bfloat16),
        grid_spec=pltpu.PrefetchScalarGridSpec(
            num_scalar_prefetch=0,
            grid=(Bp // bb, Tp // time_block),
            in_specs=[
                pl.BlockSpec((time_block, bb, Hp), lambda b, t: (t, b, 0)),   # xp
                pl.BlockSpec((bb, Hp), lambda b, t: (b, 0)),                  # h0
                # Constant block index -> never re-DMAed; single-buffer so W_hh^T
                # occupies Hp*Hp*2 bytes instead of 2x (matters for v7x's 64 MiB).
                pl.BlockSpec((Hp, Hp), lambda b, t: (0, 0),
                             pipeline_mode=pl.Buffered(1)),                   # W_hh^T
            ],
            out_specs=pl.BlockSpec((time_block, bb, Hp), lambda b, t: (t, b, 0)),
            scratch_shapes=[pltpu.VMEM((bb, Hp), jnp.bfloat16)],
        ),
        compiler_params=pltpu.CompilerParams(
            dimension_semantics=("parallel", "arbitrary"),
            vmem_limit_bytes=VMEM_LIMIT),
    )(xp, h0, w_hh_t)


# ----------------------------------------------------------------------------
# Kernel 3a: vocab projection + online softmax stats (tiled over rows x vocab);
#            intermediate logits spilled to HBM in bf16 (lse computed from f32).
# Kernel 3b: finalize log-softmax (logits - lse), lane-dense f32 stores.
# ----------------------------------------------------------------------------
def _pool_logits_kernel(h_ref, w_ref, b_ref, logits_ref, lse_ref, m_sc, s_sc):
    j = pl.program_id(1)

    @pl.when(j == 0)
    def _():
        m_sc[...] = jnp.full(m_sc.shape, -jnp.inf, m_sc.dtype)
        s_sc[...] = jnp.zeros(s_sc.shape, s_sc.dtype)

    logits = (jnp.dot(h_ref[...], w_ref[...], preferred_element_type=jnp.float32)
              + b_ref[...])                                    # (tn, tv) f32
    logits_ref[...] = logits.astype(logits_ref.dtype)          # bf16 spill to HBM

    m_prev = m_sc[...]
    m_new = jnp.maximum(m_prev, jnp.max(logits, axis=-1, keepdims=True))
    s_sc[...] = (s_sc[...] * jnp.exp(m_prev - m_new)
                 + jnp.sum(jnp.exp(logits - m_new), axis=-1, keepdims=True))
    m_sc[...] = m_new

    @pl.when(j == pl.num_programs(1) - 1)
    def _():
        lse_ref[...] = m_sc[...] + jnp.log(s_sc[...])


def _logsoftmax_finalize_kernel(logits_ref, lse_ref, o_ref):
    o_ref[...] = logits_ref[...].astype(jnp.float32) - lse_ref[...]


def pool_log_softmax(h_flat, w_pool_t, b_pool):
    """h_flat: (N, Hp) bf16, w_pool_t: (Hp, Vp) bf16, b_pool: (1, Vp) f32
       -> (N, Vp) f32 log-probs (padded vocab columns ~ -1e30)."""
    N, Hp = h_flat.shape
    Vp = w_pool_t.shape[1]
    tn = _pick_tile(N, TN_POOL_CAP, 16)
    tv = _pick_tile(Vp, TV_CAP, 128)
    nN, nV = N // tn, Vp // tv

    logits, lse = pl.pallas_call(
        _pool_logits_kernel,
        out_shape=(jax.ShapeDtypeStruct((N, Vp), jnp.bfloat16),
                   jax.ShapeDtypeStruct((N, 1), jnp.float32)),
        grid_spec=pltpu.PrefetchScalarGridSpec(
            num_scalar_prefetch=0,
            grid=(nN, nV),
            in_specs=[
                pl.BlockSpec((tn, Hp), lambda i, j: (i, 0)),
                pl.BlockSpec((Hp, tv), lambda i, j: (0, j)),
                pl.BlockSpec((1, tv), lambda i, j: (0, j)),
            ],
            out_specs=[
                pl.BlockSpec((tn, tv), lambda i, j: (i, j)),
                pl.BlockSpec((tn, 1), lambda i, j: (i, 0)),
            ],
            scratch_shapes=[pltpu.VMEM((tn, 1), jnp.float32),
                            pltpu.VMEM((tn, 1), jnp.float32)],
        ),
        compiler_params=pltpu.CompilerParams(
            dimension_semantics=("parallel", "arbitrary"),
            vmem_limit_bytes=VMEM_LIMIT),
    )(h_flat, w_pool_t, b_pool)

    return pl.pallas_call(
        _logsoftmax_finalize_kernel,
        out_shape=jax.ShapeDtypeStruct((N, Vp), jnp.float32),
        grid_spec=pltpu.PrefetchScalarGridSpec(
            num_scalar_prefetch=0,
            grid=(nN, nV),
            in_specs=[
                pl.BlockSpec((tn, tv), lambda i, j: (i, j)),
                pl.BlockSpec((tn, 1), lambda i, j: (i, 0)),
            ],
            out_specs=pl.BlockSpec((tn, tv), lambda i, j: (i, j)),
        ),
        compiler_params=pltpu.CompilerParams(
            dimension_semantics=("parallel", "parallel"),
            vmem_limit_bytes=VMEM_LIMIT),
    )(logits, lse)


# ----------------------------------------------------------------------------
# Parameters (PyTorch layout) + one-time TPU prep (pad / transpose / bf16 cast).
# ----------------------------------------------------------------------------
def init_params(key, vocab_size, emb_dim, n_hidden, n_layers):
    keys = jax.random.split(key, 2 + 4 * n_layers)
    initrange = 0.1
    params = {
        "embedding": jax.random.uniform(keys[0], (vocab_size, emb_dim),
                                        jnp.float32, -initrange, initrange),
        "pool_w": jax.random.uniform(keys[1], (vocab_size, n_hidden),
                                     jnp.float32, -initrange, initrange),
        "pool_b": jnp.zeros((vocab_size,), jnp.float32),
        "layers": [],
    }
    stdv = 1.0 / math.sqrt(n_hidden)
    for l in range(n_layers):
        in_dim = emb_dim if l == 0 else n_hidden
        k = keys[2 + 4 * l: 2 + 4 * (l + 1)]
        params["layers"].append({
            "w_ih": jax.random.uniform(k[0], (n_hidden, in_dim), jnp.float32, -stdv, stdv),
            "w_hh": jax.random.uniform(k[1], (n_hidden, n_hidden), jnp.float32, -stdv, stdv),
            "b_ih": jax.random.uniform(k[2], (n_hidden,), jnp.float32, -stdv, stdv),
            "b_hh": jax.random.uniform(k[3], (n_hidden,), jnp.float32, -stdv, stdv),
        })
    return params


def prepare_params(params):
    """One-time prep: pad to (8,128)-friendly shapes, pre-transpose, cast to bf16,
    fold b_ih + b_hh.  Done eagerly so no per-forward transposes/casts."""
    emb = params["embedding"]
    V, E = emb.shape
    H = params["layers"][0]["w_hh"].shape[0]
    E_pad, H_pad, V_pad = _round_up(E, 128), _round_up(H, 128), _round_up(V, 128)

    prepped = {
        "embedding": jnp.pad(emb, ((0, 0), (0, E_pad - E))).astype(jnp.bfloat16),
        "pool_w_t": jnp.pad(params["pool_w"],
                            ((0, V_pad - V), (0, H_pad - H))).T.astype(jnp.bfloat16),
        "pool_b": jnp.pad(params["pool_b"], (0, V_pad - V),
                          constant_values=NEG_INF).reshape(1, V_pad).astype(jnp.float32),
        "layers": [],
    }
    for layer in params["layers"]:
        I = layer["w_ih"].shape[1]
        I_pad = _round_up(I, 128)
        prepped["layers"].append({
            "w_ih_t": jnp.pad(layer["w_ih"],
                              ((0, H_pad - H), (0, I_pad - I))).T.astype(jnp.bfloat16),
            "w_hh_t": jnp.pad(layer["w_hh"],
                              ((0, H_pad - H), (0, H_pad - H))).T.astype(jnp.bfloat16),
            "bias": jnp.pad(layer["b_ih"] + layer["b_hh"],
                            (0, H_pad - H)).reshape(1, H_pad).astype(jnp.float32),
        })
    return prepped


# ----------------------------------------------------------------------------
# Full RNNModel forward (elman, unidirectional, eval mode).
# ----------------------------------------------------------------------------
def rnn_model_forward(prepped, tokens, hidden):
    """tokens: (T, B) int32, hidden: (n_layers, B, H) f32."""
    T, B = tokens.shape
    n_layers, _, H = hidden.shape
    V = prepped["embedding"].shape[0]
    H_pad = prepped["layers"][0]["w_hh_t"].shape[0]
    V_pad = prepped["pool_w_t"].shape[1]
    time_block = min(TIME_BLOCK_CAP, _round_up(T, 8))
    T_pad = _round_up(T, time_block)
    B_pad = _round_up(B, 8)

    # Embedding lookup (XLA gather glue); dropout = identity in eval mode.
    tok_p = jnp.pad(tokens, ((0, T_pad - T), (0, B_pad - B)))
    x = prepped["embedding"][tok_p]                       # (Tp, Bp, Ep) bf16

    h0_p = jnp.pad(hidden, ((0, 0), (0, B_pad - B), (0, H_pad - H)))

    new_hidden = []
    for l in range(n_layers):
        lp = prepped["layers"][l]
        # Hoisted input projection: one big GEMM over all Tp*Bp rows, bf16 output
        # (halves the xp HBM write and the per-time-block DMA of the recurrence).
        xp = matmul_bias(x.reshape(T_pad * B_pad, -1), lp["w_ih_t"], lp["bias"],
                         out_dtype=jnp.bfloat16).reshape(T_pad, B_pad, H_pad)
        # Serial recurrence: only h @ W_hh^T + tanh inside the time loop.
        y = rnn_layer(xp, h0_p[l], lp["w_hh_t"], time_block=time_block)
        new_hidden.append(y[T - 1, :B, :H].astype(jnp.float32))
        x = y                                             # bf16 inter-layer acts
        # inter-layer dropout is identity in eval mode.

    new_hidden = jnp.stack(new_hidden, axis=0)            # (n_layers, B, H)

    # Pooling linear + log_softmax over vocab (tiled, online softmax).
    h_flat = x.reshape(T_pad * B_pad, H_pad)
    logp_full = pool_log_softmax(h_flat, prepped["pool_w_t"], prepped["pool_b"])
    log_probs = (logp_full.reshape(T_pad, B_pad, V_pad)[:T, :B, :V]
                 .reshape(T * B, V))
    return log_probs, new_hidden


# ----------------------------------------------------------------------------
# Pure-JAX f32 reference (for a loose numerical cross-check).
# ----------------------------------------------------------------------------
def reference_forward(params, tokens, hidden):
    x = params["embedding"][tokens]
    hs = []
    for l, layer in enumerate(params["layers"]):
        def step(h, x_t, layer=layer):
            h_new = jnp.tanh(x_t @ layer["w_ih"].T + layer["b_ih"]
                             + h @ layer["w_hh"].T + layer["b_hh"])
            return h_new, h_new
        hT, y = lax.scan(step, hidden[l], x)
        hs.append(hT)
        x = y
    logits = x.reshape(-1, x.shape[-1]) @ params["pool_w"].T + params["pool_b"]
    return jax.nn.log_softmax(logits, axis=-1), jnp.stack(hs, axis=0)


if __name__ == "__main__":
    vocab_size = 50
    emb_dim = 32
    n_hidden = 32
    n_layers = 2
    seq_len = 8
    batch = 2

    key = jax.random.PRNGKey(0)
    pkey, tkey = jax.random.split(key)
    params = init_params(pkey, vocab_size, emb_dim, n_hidden, n_layers)
    prepped = prepare_params(params)

    tokens = jax.random.randint(tkey, (seq_len, batch), 0, vocab_size, jnp.int32)
    hidden0 = jnp.zeros((n_layers, batch, n_hidden), jnp.float32)   # init_hidden

    fwd = jax.jit(rnn_model_forward)
    log_probs, new_hidden = fwd(prepped, tokens, hidden0)
    jax.block_until_ready((log_probs, new_hidden))

    assert log_probs.shape == (seq_len * batch, vocab_size)
    assert new_hidden.shape == (n_layers, batch, n_hidden)
    # rows of log_softmax should sum (in prob space) to ~1
    # (atol is loose because the intermediate logits round-trip to HBM in bf16).
    assert jnp.allclose(jnp.sum(jnp.exp(log_probs), axis=1), 1.0, atol=2e-3)

    # Loose cross-check vs pure-JAX f32 reference (kernels use bf16 matmuls/carries).
    ref_lp, ref_h = reference_forward(params, tokens, hidden0)
    assert float(jnp.max(jnp.abs(log_probs - ref_lp))) < 5e-2
    assert float(jnp.max(jnp.abs(new_hidden - ref_h))) < 5e-2

    print("KERNEL_OK")
</pallas_src>

<mosaic_0001>
module attributes {stable_mosaic.version = 11 : i64} {
  func.func @_matmul_bias_onepass_kernel(%arg0: i32, %arg1: i32, %arg2: i32, %arg3: memref<64x128xbf16, #tpu.memory_space<vmem>>, %arg4: memref<128x128xbf16, #tpu.memory_space<vmem>>, %arg5: memref<1x128xf32, #tpu.memory_space<vmem>>, %arg6: memref<64x128xbf16, #tpu.memory_space<vmem>>) attributes {dimension_semantics = [#tpu.dimension_semantics<parallel>, #tpu.dimension_semantics<parallel>, #tpu.dimension_semantics<arbitrary>], iteration_bounds = array<i64: 1, 1, 1>, scalar_prefetch = 0 : i64, scratch_operands = 0 : i64, tpu.core_type = #tpu.core_type<tc>, window_params = [{transform_indices = @transform_0, window_bounds = array<i64: 64, 128>}, {transform_indices = @transform_1, window_bounds = array<i64: 128, 128>}, {transform_indices = @transform_2, window_bounds = array<i64: 1, 128>}, {transform_indices = @transform_3, window_bounds = array<i64: 64, 128>}]} {
    %c0 = arith.constant 0 : index
    %c0_0 = arith.constant 0 : index
    %0 = vector.load %arg3[%c0, %c0_0] : memref<64x128xbf16, #tpu.memory_space<vmem>>, vector<64x128xbf16>
    %c0_1 = arith.constant 0 : index
    %c0_2 = arith.constant 0 : index
    %1 = vector.load %arg4[%c0_1, %c0_2] : memref<128x128xbf16, #tpu.memory_space<vmem>>, vector<128x128xbf16>
    %cst = arith.constant dense<0.000000e+00> : vector<64x128xf32>
    %2 = tpu.matmul %0, %1, %cst {dimension_numbers = #tpu.dot_dimension_numbers<[1], [0], [0], [1], [0, 0, 1, 1], [], []>} : vector<64x128xbf16>, vector<128x128xbf16>, vector<64x128xf32> -> vector<64x128xf32>
    %c0_3 = arith.constant 0 : index
    %c0_4 = arith.constant 0 : index
    %3 = vector.load %arg5[%c0_3, %c0_4] : memref<1x128xf32, #tpu.memory_space<vmem>>, vector<1x128xf32>
    %4 = vector.broadcast %3 : vector<1x128xf32> to vector<64x128xf32>
    %5 = arith.addf %2, %4 : vector<64x128xf32>
    %6 = arith.truncf %5 : vector<64x128xf32> to vector<64x128xbf16>
    %c0_5 = arith.constant 0 : index
    %c0_6 = arith.constant 0 : index
    %7 = vector.load %arg6[%c0_5, %c0_6] : memref<64x128xbf16, #tpu.memory_space<vmem>>, vector<64x128xbf16>
    tpu.vector_store %arg6[%c0_5, %c0_6], %6 {strides = array<i32>} : memref<64x128xbf16, #tpu.memory_space<vmem>>, vector<64x128xbf16>,
    return
  }
  func.func @transform_0(%arg0: i32, %arg1: i32, %arg2: i32) -> (i32, i32) {
    %c0_i32 = arith.constant 0 : i32
    return %arg0, %arg2 : i32, i32
  }
  func.func @transform_1(%arg0: i32, %arg1: i32, %arg2: i32) -> (i32, i32) {
    %c0_i32 = arith.constant 0 : i32
    return %arg2, %arg1 : i32, i32
  }
  func.func @transform_2(%arg0: i32, %arg1: i32, %arg2: i32) -> (i32, i32) {
    %c0_i32 = arith.constant 0 : i32
    %c0_i32_0 = arith.constant 0 : i32
    return %c0_i32, %arg1 : i32, i32
  }
  func.func @transform_3(%arg0: i32, %arg1: i32, %arg2: i32) -> (i32, i32) {
    %c0_i32 = arith.constant 0 : i32
    return %arg0, %arg1 : i32, i32
  }
}

module attributes {stable_mosaic.version = 11 : i64} {
  func.func @_rnn_recur_kernel(%arg0: i32, %arg1: i32, %arg2: memref<8x8x128xbf16, #tpu.memory_space<vmem>>, %arg3: memref<8x128xf32, #tpu.memory_space<vmem>>, %arg4: memref<128x128xbf16, #tpu.memory_space<vmem>>, %arg5: memref<8x8x128xbf16, #tpu.memory_space<vmem>>, %arg6: memref<8x128xbf16, #tpu.memory_space<vmem>>) attributes {dimension_semantics = [#tpu.dimension_semantics<parallel>, #tpu.dimension_semantics<arbitrary>], iteration_bounds = array<i64: 1, 1>, scalar_prefetch = 0 : i64, scratch_operands = 1 : i64, tpu.core_type = #tpu.core_type<tc>, window_params = [{transform_indices = @transform_0, window_bounds = array<i64: 8, 8, 128>}, {transform_indices = @transform_1, window_bounds = array<i64: 8, 128>}, {pipeline_mode = #tpu.pipeline_mode<synchronous>, transform_indices = @transform_2, window_bounds = array<i64: 128, 128>}, {transform_indices = @transform_3, window_bounds = array<i64: 8, 8, 128>}]} {
    %c0_i32 = arith.constant 0 : i32
    %0 = arith.cmpi eq, %arg1, %c0_i32 : i32
    %1 = arith.extui %0 : i1 to i32
    %c0_i32_0 = arith.constant 0 : i32
    %2 = arith.cmpi ne, %1, %c0_i32_0 : i32
    scf.if %2 {
      %c0_88 = arith.constant 0 : index
      %c0_89 = arith.constant 0 : index
      %123 = vector.load %arg3[%c0_88, %c0_89] : memref<8x128xf32, #tpu.memory_space<vmem>>, vector<8x128xf32>
      %124 = arith.truncf %123 : vector<8x128xf32> to vector<8x128xbf16>
      %c0_90 = arith.constant 0 : index
      %c0_91 = arith.constant 0 : index
      %125 = vector.load %arg6[%c0_90, %c0_91] : memref<8x128xbf16, #tpu.memory_space<vmem>>, vector<8x128xbf16>
      tpu.vector_store %arg6[%c0_90, %c0_91], %124 {strides = array<i32>} : memref<8x128xbf16, #tpu.memory_space<vmem>>, vector<8x128xbf16>,
    } else {
    }
    %c0_i32_1 = arith.constant 0 : i32
    %c0 = arith.constant 0 : index
    %c0_2 = arith.constant 0 : index
    %3 = vector.load %arg6[%c0, %c0_2] : memref<8x128xbf16, #tpu.memory_space<vmem>>, vector<8x128xbf16>
    %4 = arith.index_cast %c0_i32_1 : i32 to index
    %c0_3 = arith.constant 0 : index
    %c0_4 = arith.constant 0 : index
    %5 = vector.load %arg2[%4, %c0_3, %c0_4] : memref<8x8x128xbf16, #tpu.memory_space<vmem>>, vector<1x8x128xbf16>
    %6 = vector.shape_cast %5 : vector<1x8x128xbf16> to vector<8x128xbf16>
    %7 = arith.extf %6 : vector<8x128xbf16> to vector<8x128xf32>
    %c0_5 = arith.constant 0 : index
    %c0_6 = arith.constant 0 : index
    %8 = vector.load %arg4[%c0_5, %c0_6] : memref<128x128xbf16, #tpu.memory_space<vmem>>, vector<128x128xbf16>
    %cst = arith.constant dense<0.000000e+00> : vector<8x128xf32>
    %9 = tpu.matmul %3, %8, %cst {dimension_numbers = #tpu.dot_dimension_numbers<[1], [0], [0], [1], [0, 0, 1, 1], [], []>} : vector<8x128xbf16>, vector<128x128xbf16>, vector<8x128xf32> -> vector<8x128xf32>
    %10 = arith.addf %7, %9 : vector<8x128xf32>
    %11 = math.tanh %10 : vector<8x128xf32>
    %12 = arith.truncf %11 : vector<8x128xf32> to vector<8x128xbf16>
    %c0_7 = arith.constant 0 : index
    %c0_8 = arith.constant 0 : index
    %13 = vector.load %arg6[%c0_7, %c0_8] : memref<8x128xbf16, #tpu.memory_space<vmem>>, vector<8x128xbf16>
    tpu.vector_store %arg6[%c0_7, %c0_8], %12 {strides = array<i32>} : memref<8x128xbf16, #tpu.memory_space<vmem>>, vector<8x128xbf16>,
    %14 = arith.index_cast %c0_i32_1 : i32 to index
    %c0_9 = arith.constant 0 : index
    %c0_10 = arith.constant 0 : index
    %15 = vector.load %arg5[%14, %c0_9, %c0_10] : memref<8x8x128xbf16, #tpu.memory_space<vmem>>, vector<1x8x128xbf16>
    %16 = vector.shape_cast %15 : vector<1x8x128xbf16> to vector<8x128xbf16>
    %17 = vector.shape_cast %12 : vector<8x128xbf16> to vector<1x8x128xbf16>
    tpu.vector_store %arg5[%14, %c0_9, %c0_10], %17 {strides = array<i32>} : memref<8x8x128xbf16, #tpu.memory_space<vmem>>, vector<1x8x128xbf16>,
    %c1_i32 = arith.constant 1 : i32
    %c0_11 = arith.constant 0 : index
    %c0_12 = arith.constant 0 : index
    %18 = vector.load %arg6[%c0_11, %c0_12] : memref<8x128xbf16, #tpu.memory_space<vmem>>, vector<8x128xbf16>
    %19 = arith.index_cast %c1_i32 : i32 to index
    %c0_13 = arith.constant 0 : index
    %c0_14 = arith.constant 0 : index
    %20 = vector.load %arg2[%19, %c0_13, %c0_14] : memref<8x8x128xbf16, #tpu.memory_space<vmem>>, vector<1x8x128xbf16>
    %21 = vector.shape_cast %20 : vector<1x8x128xbf16> to vector<8x128xbf16>
    %22 = arith.extf %21 : vector<8x128xbf16> to vector<8x128xf32>
    %c0_15 = arith.constant 0 : index
    %c0_16 = arith.constant 0 : index
    %23 = vector.load %arg4[%c0_15, %c0_16] : memref<128x128xbf16, #tpu.memory_space<vmem>>, vector<128x128xbf16>
    %cst_17 = arith.constant dense<0.000000e+00> : vector<8x128xf32>
    %24 = tpu.matmul %18, %23, %cst_17 {dimension_numbers = #tpu.dot_dimension_numbers<[1], [0], [0], [1], [0, 0, 1, 1], [], []>} : vector<8x128xbf16>, vector<128x128xbf16>, vector<8x128xf32> -> vector<8x128xf32>
    %25 = arith.addf %22, %24 : vector<8x128xf32>
    %26 = math.tanh %25 : vector<8x128xf32>
    %27 = arith.truncf %26 : vector<8x128xf32> to vector<8x128xbf16>
    %c0_18 = arith.constant 0 : index
    %c0_19 = arith.constant 0 : index
    %28 = vector.load %arg6[%c0_18, %c0_19] : memref<8x128xbf16, #tpu.memory_space<vmem>>, vector<8x128xbf16>
    tpu.vector_store %arg6[%c0_18, %c0_19], %27 {strides = array<i32>} : memref<8x128xbf16, #tpu.memory_space<vmem>>, vector<8x128xbf16>,
    %29 = arith.index_cast %c1_i32 : i32 to index
    %c0_20 = arith.constant 0 : index
    %c0_21 = arith.constant 0 : index
    %30 = vector.load %arg5[%29, %c0_20, %c0_21] : memref<8x8x128xbf16, #tpu.memory_space<vmem>>, vector<1x8x128xbf16>
    %31 = vector.shape_cast %30 : vector<1x8x128xbf16> to vector<8x128xbf16>
    %32 = vector.shape_cast %27 : vector<8x128xbf16> to vector<1x8x128xbf16>
    tpu.vector_store %arg5[%29, %c0_20, %c0_21], %32 {strides = array<i32>} : memref<8x8x128xbf16, #tpu.memory_space<vmem>>, vector<1x8x128xbf16>,
    %c2_i32 = arith.constant 2 : i32
    %c0_22 = arith.constant 0 : index
    %c0_23 = arith.constant 0 : index
    %33 = vector.load %arg6[%c0_22, %c0_23] : memref<8x128xbf16, #tpu.memory_space<vmem>>, vector<8x128xbf16>
    %34 = arith.index_cast %c2_i32 : i32 to index
    %c0_24 = arith.constant 0 : index
    %c0_25 = arith.constant 0 : index
    %35 = vector.load %arg2[%34, %c0_24, %c0_25] : memref<8x8x128xbf16, #tpu.memory_space<vmem>>, vector<1x8x128xbf16>
    %36 = vector.shape_cast %35 : vector<1x8x128xbf16> to vector<8x128xbf16>
    %37 = arith.extf %36 : vector<8x128xbf16> to vector<8x128xf32>
    %c0_26 = arith.constant 0 : index
    %c0_27 = arith.constant 0 : index
    %38 = vector.load %arg4[%c0_26, %c0_27] : memref<128x128xbf16, #tpu.memory_space<vmem>>, vector<128x128xbf16>
    %cst_28 = arith.constant dense<0.000000e+00> : vector<8x128xf32>
    %39 = tpu.matmul %33, %38, %cst_28 {dimension_numbers = #tpu.dot_dimension_numbers<[1], [0], [0], [1], [0, 0, 1, 1], [], []>} : vector<8x128xbf16>, vector<128x128xbf16>, vector<8x128xf32> -> vector<8x128xf32>
    %40 = arith.addf %37, %39 : vector<8x128xf32>
    %41 = math.tanh %40 : vector<8x128xf32>
    %42 = arith.truncf %41 : vector<8x128xf32> to vector<8x128xbf16>
    %c0_29 = arith.constant 0 : index
    %c0_30 = arith.constant 0 : index
    %43 = vector.load %arg6[%c0_29, %c0_30] : memref<8x128xbf16, #tpu.memory_space<vmem>>, vector<8x128xbf16>
    tpu.vector_store %arg6[%c0_29, %c0_30], %42 {strides = array<i32>} : memref<8x128xbf16, #tpu.memory_space<vmem>>, vector<8x128xbf16>,
    %44 = arith.index_cast %c2_i32 : i32 to index
    %c0_31 = arith.constant 0 : index
    %c0_32 = arith.constant 0 : index
    %45 = vector.load %arg5[%44, %c0_31, %c0_32] : memref<8x8x128xbf16, #tpu.memory_space<vmem>>, vector<1x8x128xbf16>
    %46 = vector.shape_cast %45 : vector<1x8x128xbf16> to vector<8x128xbf16>
    %47 = vector.shape_cast %42 : vector<8x128xbf16> to vector<1x8x128xbf16>
    tpu.vector_store %arg5[%44, %c0_31, %c0_32], %47 {strides = array<i32>} : memref<8x8x128xbf16, #tpu.memory_space<vmem>>, vector<1x8x128xbf16>,
    %c3_i32 = arith.constant 3 : i32
    %c0_33 = arith.constant 0 : index
    %c0_34 = arith.constant 0 : index
    %48 = vector.load %arg6[%c0_33, %c0_34] : memref<8x128xbf16, #tpu.memory_space<vmem>>, vector<8x128xbf16>
    %49 = arith.index_cast %c3_i32 : i32 to index
    %c0_35 = arith.constant 0 : index
    %c0_36 = arith.constant 0 : index
    %50 = vector.load %arg2[%49, %c0_35, %c0_36] : memref<8x8x128xbf16, #tpu.memory_space<vmem>>, vector<1x8x128xbf16>
    %51 = vector.shape_cast %50 : vector<1x8x128xbf16> to vector<8x128xbf16>
    %52 = arith.extf %51 : vector<8x128xbf16> to vector<8x128xf32>
    %c0_37 = arith.constant 0 : index
    %c0_38 = arith.constant 0 : index
    %53 = vector.load %arg4[%c0_37, %c0_38] : memref<128x128xbf16, #tpu.memory_space<vmem>>, vector<128x128xbf16>
    %cst_39 = arith.constant dense<0.000000e+00> : vector<8x128xf32>
    %54 = tpu.matmul %48, %53, %cst_39 {dimension_numbers = #tpu.dot_dimension_numbers<[1], [0], [0], [1], [0, 0, 1, 1], [], []>} : vector<8x128xbf16>, vector<128x128xbf16>, vector<8x128xf32> -> vector<8x128xf32>
    %55 = arith.addf %52, %54 : vector<8x128xf32>
    %56 = math.tanh %55 : vector<8x128xf32>
    %57 = arith.truncf %56 : vector<8x128xf32> to vector<8x128xbf16>
    %c0_40 = arith.constant 0 : index
    %c0_41 = arith.constant 0 : index
    %58 = vector.load %arg6[%c0_40, %c0_41] : memref<8x128xbf16, #tpu.memory_space<vmem>>, vector<8x128xbf16>
    tpu.vector_store %arg6[%c0_40, %c0_41], %57 {strides = array<i32>} : memref<8x128xbf16, #tpu.memory_space<vmem>>, vector<8x128xbf16>,
    %59 = arith.index_cast %c3_i32 : i32 to index
    %c0_42 = arith.constant 0 : index
    %c0_43 = arith.constant 0 : index
    %60 = vector.load %arg5[%59, %c0_42, %c0_43] : memref<8x8x128xbf16, #tpu.memory_space<vmem>>, vector<1x8x128xbf16>
    %61 = vector.shape_cast %60 : vector<1x8x128xbf16> to vector<8x128xbf16>
    %62 = vector.shape_cast %57 : vector<8x128xbf16> to vector<1x8x128xbf16>
    tpu.vector_store %arg5[%59, %c0_42, %c0_43], %62 {strides = array<i32>} : memref<8x8x128xbf16, #tpu.memory_space<vmem>>, vector<1x8x128xbf16>,
    %c4_i32 = arith.constant 4 : i32
    %c0_44 = arith.constant 0 : index
    %c0_45 = arith.constant 0 : index
    %63 = vector.load %arg6[%c0_44, %c0_45] : memref<8x128xbf16, #tpu.memory_space<vmem>>, vector<8x128xbf16>
    %64 = arith.index_cast %c4_i32 : i32 to index
    %c0_46 = arith.constant 0 : index
    %c0_47 = arith.constant 0 : index
    %65 = vector.load %arg2[%64, %c0_46, %c0_47] : memref<8x8x128xbf16, #tpu.memory_space<vmem>>, vector<1x8x128xbf16>
    %66 = vector.shape_cast %65 : vector<1x8x128xbf16> to vector<8x128xbf16>
    %67 = arith.extf %66 : vector<8x128xbf16> to vector<8x128xf32>
    %c0_48 = arith.constant 0 : index
    %c0_49 = arith.constant 0 : index
    %68 = vector.load %arg4[%c0_48, %c0_49] : memref<128x128xbf16, #tpu.memory_space<vmem>>, vector<128x128xbf16>
    %cst_50 = arith.constant dense<0.000000e+00> : vector<8x128xf32>
    %69 = tpu.matmul %63, %68, %cst_50 {dimension_numbers = #tpu.dot_dimension_numbers<[1], [0], [0], [1], [0, 0, 1, 1], [], []>} : vector<8x128xbf16>, vector<128x128xbf16>, vector<8x128xf32> -> vector<8x128xf32>
    %70 = arith.addf %67, %69 : vector<8x128xf32>
    %71 = math.tanh %70 : vector<8x128xf32>
    %72 = arith.truncf %71 : vector<8x128xf32> to vector<8x128xbf16>
    %c0_51 = arith.constant 0 : index
    %c0_52 = arith.constant 0 : index
    %73 = vector.load %arg6[%c0_51, %c0_52] : memref<8x128xbf16, #tpu.memory_space<vmem>>, vector<8x128xbf16>
    tpu.vector_store %arg6[%c0_51, %c0_52], %72 {strides = array<i32>} : memref<8x128xbf16, #tpu.memory_space<vmem>>, vector<8x128xbf16>,
    %74 = arith.index_cast %c4_i32 : i32 to index
    %c0_53 = arith.constant 0 : index
    %c0_54 = arith.constant 0 : index
    %75 = vector.load %arg5[%74, %c0_53, %c0_54] : memref<8x8x128xbf16, #tpu.memory_space<vmem>>, vector<1x8x128xbf16>
    %76 = vector.shape_cast %75 : vector<1x8x128xbf16> to vector<8x128xbf16>
    %77 = vector.shape_cast %72 : vector<8x128xbf16> to vector<1x8x128xbf16>
    tpu.vector_store %arg5[%74, %c0_53, %c0_54], %77 {strides = array<i32>} : memref<8x8x128xbf16, #tpu.memory_space<vmem>>, vector<1x8x128xbf16>,
    %c5_i32 = arith.constant 5 : i32
    %c0_55 = arith.constant 0 : index
    %c0_56 = arith.constant 0 : index
    %78 = vector.load %arg6[%c0_55, %c0_56] : memref<8x128xbf16, #tpu.memory_space<vmem>>, vector<8x128xbf16>
    %79 = arith.index_cast %c5_i32 : i32 to index
    %c0_57 = arith.constant 0 : index
    %c0_58 = arith.constant 0 : index
    %80 = vector.load %arg2[%79, %c0_57, %c0_58] : memref<8x8x128xbf16, #tpu.memory_space<vmem>>, vector<1x8x128xbf16>
    %81 = vector.shape_cast %80 : vector<1x8x128xbf16> to vector<8x128xbf16>
    %82 = arith.extf %81 : vector<8x128xbf16> to vector<8x128xf32>
    %c0_59 = arith.constant 0 : index
    %c0_60 = arith.constant 0 : index
    %83 = vector.load %arg4[%c0_59, %c0_60] : memref<128x128xbf16, #tpu.memory_space<vmem>>, vector<128x128xbf16>
    %cst_61 = arith.constant dense<0.000000e+00> : vector<8x128xf32>
    %84 = tpu.matmul %78, %83, %cst_61 {dimension_numbers = #tpu.dot_dimension_numbers<[1], [0], [0], [1], [0, 0, 1, 1], [], []>} : vector<8x128xbf16>, vector<128x128xbf16>, vector<8x128xf32> -> vector<8x128xf32>
    %85 = arith.addf %82, %84 : vector<8x128xf32>
    %86 = math.tanh %85 : vector<8x128xf32>
    %87 = arith.truncf %86 : vector<8x128xf32> to vector<8x128xbf16>
    %c0_62 = arith.constant 0 : index
    %c0_63 = arith.constant 0 : index
    %88 = vector.load %arg6[%c0_62, %c0_63] : memref<8x128xbf16, #tpu.memory_space<vmem>>, vector<8x128xbf16>
    tpu.vector_store %arg6[%c0_62, %c0_63], %87 {strides = array<i32>} : memref<8x128xbf16, #tpu.memory_space<vmem>>, vector<8x128xbf16>,
    %89 = arith.index_cast %c5_i32 : i32 to index
    %c0_64 = arith.constant 0 : index
    %c0_65 = arith.constant 0 : index
    %90 = vector.load %arg5[%89, %c0_64, %c0_65] : memref<8x8x128xbf16, #tpu.memory_space<vmem>>, vector<1x8x128xbf16>
    %91 = vector.shape_cast %90 : vector<1x8x128xbf16> to vector<8x128xbf16>
    %92 = vector.shape_cast %87 : vector<8x128xbf16> to vector<1x8x128xbf16>
    tpu.vector_store %arg5[%89, %c0_64, %c0_65], %92 {strides = array<i32>} : memref<8x8x128xbf16, #tpu.memory_space<vmem>>, vector<1x8x128xbf16>,
    %c6_i32 = arith.constant 6 : i32
    %c0_66 = arith.constant 0 : index
    %c0_67 = arith.constant 0 : index
    %93 = vector.load %arg6[%c0_66, %c0_67] : memref<8x128xbf16, #tpu.memory_space<vmem>>, vector<8x128xbf16>
    %94 = arith.index_cast %c6_i32 : i32 to index
    %c0_68 = arith.constant 0 : index
    %c0_69 = arith.constant 0 : index
    %95 = vector.load %arg2[%94, %c0_68, %c0_69] : memref<8x8x128xbf16, #tpu.memory_space<vmem>>, vector<1x8x128xbf16>
    %96 = vector.shape_cast %95 : vector<1x8x128xbf16> to vector<8x128xbf16>
    %97 = arith.extf %96 : vector<8x128xbf16> to vector<8x128xf32>
    %c0_70 = arith.constant 0 : index
    %c0_71 = arith.constant 0 : index
    %98 = vector.load %arg4[%c0_70, %c0_71] : memref<128x128xbf16, #tpu.memory_space<vmem>>, vector<128x128xbf16>
    %cst_72 = arith.constant dense<0.000000e+00> : vector<8x128xf32>
    %99 = tpu.matmul %93, %98, %cst_72 {dimension_numbers = #tpu.dot_dimension_numbers<[1], [0], [0], [1], [0, 0, 1, 1], [], []>} : vector<8x128xbf16>, vector<128x128xbf16>, vector<8x128xf32> -> vector<8x128xf32>
    %100 = arith.addf %97, %99 : vector<8x128xf32>
    %101 = math.tanh %100 : vector<8x128xf32>
    %102 = arith.truncf %101 : vector<8x128xf32> to vector<8x128xbf16>
    %c0_73 = arith.constant 0 : index
    %c0_74 = arith.constant 0 : index
    %103 = vector.load %arg6[%c0_73, %c0_74] : memref<8x128xbf16, #tpu.memory_space<vmem>>, vector<8x128xbf16>
    tpu.vector_store %arg6[%c0_73, %c0_74], %102 {strides = array<i32>} : memref<8x128xbf16, #tpu.memory_space<vmem>>, vector<8x128xbf16>,
    %104 = arith.index_cast %c6_i32 : i32 to index
    %c0_75 = arith.constant 0 : index
    %c0_76 = arith.constant 0 : index
    %105 = vector.load %arg5[%104, %c0_75, %c0_76] : memref<8x8x128xbf16, #tpu.memory_space<vmem>>, vector<1x8x128xbf16>
    %106 = vector.shape_cast %105 : vector<1x8x128xbf16> to vector<8x128xbf16>
    %107 = vector.shape_cast %102 : vector<8x128xbf16> to vector<1x8x128xbf16>
    tpu.vector_store %arg5[%104, %c0_75, %c0_76], %107 {strides = array<i32>} : memref<8x8x128xbf16, #tpu.memory_space<vmem>>, vector<1x8x128xbf16>,
    %c7_i32 = arith.constant 7 : i32
    %c0_77 = arith.constant 0 : index
    %c0_78 = arith.constant 0 : index
    %108 = vector.load %arg6[%c0_77, %c0_78] : memref<8x128xbf16, #tpu.memory_space<vmem>>, vector<8x128xbf16>
    %109 = arith.index_cast %c7_i32 : i32 to index
    %c0_79 = arith.constant 0 : index
    %c0_80 = arith.constant 0 : index
    %110 = vector.load %arg2[%109, %c0_79, %c0_80] : memref<8x8x128xbf16, #tpu.memory_space<vmem>>, vector<1x8x128xbf16>
    %111 = vector.shape_cast %110 : vector<1x8x128xbf16> to vector<8x128xbf16>
    %112 = arith.extf %111 : vector<8x128xbf16> to vector<8x128xf32>
    %c0_81 = arith.constant 0 : index
    %c0_82 = arith.constant 0 : index
    %113 = vector.load %arg4[%c0_81, %c0_82] : memref<128x128xbf16, #tpu.memory_space<vmem>>, vector<128x128xbf16>
    %cst_83 = arith.constant dense<0.000000e+00> : vector<8x128xf32>
    %114 = tpu.matmul %108, %113, %cst_83 {dimension_numbers = #tpu.dot_dimension_numbers<[1], [0], [0], [1], [0, 0, 1, 1], [], []>} : vector<8x128xbf16>, vector<128x128xbf16>, vector<8x128xf32> -> vector<8x128xf32>
    %115 = arith.addf %112, %114 : vector<8x128xf32>
    %116 = math.tanh %115 : vector<8x128xf32>
    %117 = arith.truncf %116 : vector<8x128xf32> to vector<8x128xbf16>
    %c0_84 = arith.constant 0 : index
    %c0_85 = arith.constant 0 : index
    %118 = vector.load %arg6[%c0_84, %c0_85] : memref<8x128xbf16, #tpu.memory_space<vmem>>, vector<8x128xbf16>
    tpu.vector_store %arg6[%c0_84, %c0_85], %117 {strides = array<i32>} : memref<8x128xbf16, #tpu.memory_space<vmem>>, vector<8x128xbf16>,
    %119 = arith.index_cast %c7_i32 : i32 to index
    %c0_86 = arith.constant 0 : index
    %c0_87 = arith.constant 0 : index
    %120 = vector.load %arg5[%119, %c0_86, %c0_87] : memref<8x8x128xbf16, #tpu.memory_space<vmem>>, vector<1x8x128xbf16>
    %121 = vector.shape_cast %120 : vector<1x8x128xbf16> to vector<8x128xbf16>
    %122 = vector.shape_cast %117 : vector<8x128xbf16> to vector<1x8x128xbf16>
    tpu.vector_store %arg5[%119, %c0_86, %c0_87], %122 {strides = array<i32>} : memref<8x8x128xbf16, #tpu.memory_space<vmem>>, vector<1x8x128xbf16>,
    %c8_i32 = arith.constant 8 : i32
    return
  }
  func.func @transform_0(%arg0: i32, %arg1: i32) -> (i32, i32, i32) {
    %c0_i32 = arith.constant 0 : i32
    %c0_i32_0 = arith.constant 0 : i32
    return %arg1, %arg0, %c0_i32 : i32, i32, i32
  }
  func.func @transform_1(%arg0: i32, %arg1: i32) -> (i32, i32) {
    %c0_i32 = arith.constant 0 : i32
    %c0_i32_0 = arith.constant 0 : i32
    return %arg0, %c0_i32 : i32, i32
  }
  func.func @transform_2(%arg0: i32, %arg1: i32) -> (i32, i32) {
    %c0_i32 = arith.constant 0 : i32
    %c0_i32_0 = arith.constant 0 : i32
    %c0_i32_1 = arith.constant 0 : i32
    return %c0_i32, %c0_i32_0 : i32, i32
  }
  func.func @transform_3(%arg0: i32, %arg1: i32) -> (i32, i32, i32) {
    %c0_i32 = arith.constant 0 : i32
    %c0_i32_0 = arith.constant 0 : i32
    return %arg1, %arg0, %c0_i32 : i32, i32, i32
  }
}

module attributes {stable_mosaic.version = 11 : i64} {
  func.func @_pool_logits_kernel(%arg0: i32, %arg1: i32, %arg2: memref<64x128xbf16, #tpu.memory_space<vmem>>, %arg3: memref<128x128xbf16, #tpu.memory_space<vmem>>, %arg4: memref<1x128xf32, #tpu.memory_space<vmem>>, %arg5: memref<64x128xbf16, #tpu.memory_space<vmem>>, %arg6: memref<64x1xf32, #tpu.memory_space<vmem>>, %arg7: memref<64x1xf32, #tpu.memory_space<vmem>>, %arg8: memref<64x1xf32, #tpu.memory_space<vmem>>) attributes {dimension_semantics = [#tpu.dimension_semantics<parallel>, #tpu.dimension_semantics<arbitrary>], iteration_bounds = array<i64: 1, 1>, scalar_prefetch = 0 : i64, scratch_operands = 2 : i64, tpu.core_type = #tpu.core_type<tc>, window_params = [{transform_indices = @transform_0, window_bounds = array<i64: 64, 128>}, {transform_indices = @transform_1, window_bounds = array<i64: 128, 128>}, {transform_indices = @transform_2, window_bounds = array<i64: 1, 128>}, {transform_indices = @transform_3, window_bounds = array<i64: 64, 128>}, {transform_indices = @transform_4, window_bounds = array<i64: 64, 1>}]} {
    %c0_i32 = arith.constant 0 : i32
    %0 = arith.cmpi eq, %arg1, %c0_i32 : i32
    %1 = arith.extui %0 : i1 to i32
    %c0_i32_0 = arith.constant 0 : i32
    %2 = arith.cmpi ne, %1, %c0_i32_0 : i32
    scf.if %2 {
      %cst_20 = arith.constant 0xFF800000 : f32
      %30 = vector.broadcast %cst_20 : f32 to vector<64x1xf32>
      %c0_21 = arith.constant 0 : index
      %c0_22 = arith.constant 0 : index
      %31 = vector.load %arg7[%c0_21, %c0_22] : memref<64x1xf32, #tpu.memory_space<vmem>>, vector<64x1xf32>
      tpu.vector_store %arg7[%c0_21, %c0_22], %30 {strides = array<i32>} : memref<64x1xf32, #tpu.memory_space<vmem>>, vector<64x1xf32>,
      %cst_23 = arith.constant 0.000000e+00 : f32
      %32 = vector.broadcast %cst_23 : f32 to vector<64x1xf32>
      %c0_24 = arith.constant 0 : index
      %c0_25 = arith.constant 0 : index
      %33 = vector.load %arg8[%c0_24, %c0_25] : memref<64x1xf32, #tpu.memory_space<vmem>>, vector<64x1xf32>
      tpu.vector_store %arg8[%c0_24, %c0_25], %32 {strides = array<i32>} : memref<64x1xf32, #tpu.memory_space<vmem>>, vector<64x1xf32>,
    } else {
    }
    %c0 = arith.constant 0 : index
    %c0_1 = arith.constant 0 : index
    %3 = vector.load %arg2[%c0, %c0_1] : memref<64x128xbf16, #tpu.memory_space<vmem>>, vector<64x128xbf16>
    %c0_2 = arith.constant 0 : index
    %c0_3 = arith.constant 0 : index
    %4 = vector.load %arg3[%c0_2, %c0_3] : memref<128x128xbf16, #tpu.memory_space<vmem>>, vector<128x128xbf16>
    %cst = arith.constant dense<0.000000e+00> : vector<64x128xf32>
    %5 = tpu.matmul %3, %4, %cst {dimension_numbers = #tpu.dot_dimension_numbers<[1], [0], [0], [1], [0, 0, 1, 1], [], []>} : vector<64x128xbf16>, vector<128x128xbf16>, vector<64x128xf32> -> vector<64x128xf32>
    %c0_4 = arith.constant 0 : index
    %c0_5 = arith.constant 0 : index
    %6 = vector.load %arg4[%c0_4, %c0_5] : memref<1x128xf32, #tpu.memory_space<vmem>>, vector<1x128xf32>
    %7 = vector.broadcast %6 : vector<1x128xf32> to vector<64x128xf32>
    %8 = arith.addf %5, %7 : vector<64x128xf32>
    %9 = arith.truncf %8 : vector<64x128xf32> to vector<64x128xbf16>
    %c0_6 = arith.constant 0 : index
    %c0_7 = arith.constant 0 : index
    %10 = vector.load %arg5[%c0_6, %c0_7] : memref<64x128xbf16, #tpu.memory_space<vmem>>, vector<64x128xbf16>
    tpu.vector_store %arg5[%c0_6, %c0_7], %9 {strides = array<i32>} : memref<64x128xbf16, #tpu.memory_space<vmem>>, vector<64x128xbf16>,
    %c0_8 = arith.constant 0 : index
    %c0_9 = arith.constant 0 : index
    %11 = vector.load %arg7[%c0_8, %c0_9] : memref<64x1xf32, #tpu.memory_space<vmem>>, vector<64x1xf32>
    %cst_10 = arith.constant dense<0xFF800000> : vector<64xf32>
    %12 = vector.multi_reduction <maximumf>, %8, %cst_10 [1] : vector<64x128xf32> to vector<64xf32>
    %13 = vector.shape_cast %12 : vector<64xf32> to vector<64x1xf32>
    %14 = arith.maximumf %11, %13 : vector<64x1xf32>
    %c0_11 = arith.constant 0 : index
    %c0_12 = arith.constant 0 : index
    %15 = vector.load %arg8[%c0_11, %c0_12] : memref<64x1xf32, #tpu.memory_space<vmem>>, vector<64x1xf32>
    %16 = arith.subf %11, %14 : vector<64x1xf32>
    %17 = math.exp %16 : vector<64x1xf32>
    %18 = arith.mulf %15, %17 : vector<64x1xf32>
    %19 = vector.broadcast %14 : vector<64x1xf32> to vector<64x128xf32>
    %20 = arith.subf %8, %19 : vector<64x128xf32>
    %21 = math.exp %20 : vector<64x128xf32>
    %cst_13 = arith.constant dense<0.000000e+00> : vector<64xf32>
    %22 = vector.multi_reduction <add>, %21, %cst_13 [1] : vector<64x128xf32> to vector<64xf32>
    %23 = vector.shape_cast %22 : vector<64xf32> to vector<64x1xf32>
    %24 = arith.addf %18, %23 : vector<64x1xf32>
    %c0_14 = arith.constant 0 : index
    %c0_15 = arith.constant 0 : index
    %25 = vector.load %arg8[%c0_14, %c0_15] : memref<64x1xf32, #tpu.memory_space<vmem>>, vector<64x1xf32>
    tpu.vector_store %arg8[%c0_14, %c0_15], %24 {strides = array<i32>} : memref<64x1xf32, #tpu.memory_space<vmem>>, vector<64x1xf32>,
    %c0_16 = arith.constant 0 : index
    %c0_17 = arith.constant 0 : index
    %26 = vector.load %arg7[%c0_16, %c0_17] : memref<64x1xf32, #tpu.memory_space<vmem>>, vector<64x1xf32>
    tpu.vector_store %arg7[%c0_16, %c0_17], %14 {strides = array<i32>} : memref<64x1xf32, #tpu.memory_space<vmem>>, vector<64x1xf32>,
    %c0_i32_18 = arith.constant 0 : i32
    %27 = arith.cmpi eq, %arg1, %c0_i32_18 : i32
    %28 = arith.extui %27 : i1 to i32
    %c0_i32_19 = arith.constant 0 : i32
    %29 = arith.cmpi ne, %28, %c0_i32_19 : i32
    scf.if %29 {
      %c0_20 = arith.constant 0 : index
      %c0_21 = arith.constant 0 : index
      %30 = vector.load %arg7[%c0_20, %c0_21] : memref<64x1xf32, #tpu.memory_space<vmem>>, vector<64x1xf32>
      %c0_22 = arith.constant 0 : index
      %c0_23 = arith.constant 0 : index
      %31 = vector.load %arg8[%c0_22, %c0_23] : memref<64x1xf32, #tpu.memory_space<vmem>>, vector<64x1xf32>
      %32 = math.log %31 : vector<64x1xf32>
      %33 = arith.addf %30, %32 : vector<64x1xf32>
      %c0_24 = arith.constant 0 : index
      %c0_25 = arith.constant 0 : index
      %34 = vector.load %arg6[%c0_24, %c0_25] : memref<64x1xf32, #tpu.memory_space<vmem>>, vector<64x1xf32>
      tpu.vector_store %arg6[%c0_24, %c0_25], %33 {strides = array<i32>} : memref<64x1xf32, #tpu.memory_space<vmem>>, vector<64x1xf32>,
    } else {
    }
    return
  }
  func.func @transform_0(%arg0: i32, %arg1: i32) -> (i32, i32) {
    %c0_i32 = arith.constant 0 : i32
    %c0_i32_0 = arith.constant 0 : i32
    return %arg0, %c0_i32 : i32, i32
  }
  func.func @transform_1(%arg0: i32, %arg1: i32) -> (i32, i32) {
    %c0_i32 = arith.constant 0 : i32
    %c0_i32_0 = arith.constant 0 : i32
    return %c0_i32, %arg1 : i32, i32
  }
  func.func @transform_2(%arg0: i32, %arg1: i32) -> (i32, i32) {
    %c0_i32 = arith.constant 0 : i32
    %c0_i32_0 = arith.constant 0 : i32
    return %c0_i32, %arg1 : i32, i32
  }
  func.func @transform_3(%arg0: i32, %arg1: i32) -> (i32, i32) {
    %c0_i32 = arith.constant 0 : i32
    return %arg0, %arg1 : i32, i32
  }
  func.func @transform_4(%arg0: i32, %arg1: i32) -> (i32, i32) {
    %c0_i32 = arith.constant 0 : i32
    %c0_i32_0 = arith.constant 0 : i32
    return %arg0, %c0_i32 : i32, i32
  }
}

module attributes {stable_mosaic.version = 11 : i64} {
  func.func @_logsoftmax_finalize_kernel(%arg0: i32, %arg1: i32, %arg2: memref<64x128xbf16, #tpu.memory_space<vmem>>, %arg3: memref<64x1xf32, #tpu.memory_space<vmem>>, %arg4: memref<64x128xf32, #tpu.memory_space<vmem>>) attributes {dimension_semantics = [#tpu.dimension_semantics<parallel>, #tpu.dimension_semantics<parallel>], iteration_bounds = array<i64: 1, 1>, scalar_prefetch = 0 : i64, scratch_operands = 0 : i64, tpu.core_type = #tpu.core_type<tc>, window_params = [{transform_indices = @transform_0, window_bounds = array<i64: 64, 128>}, {transform_indices = @transform_1, window_bounds = array<i64: 64, 1>}, {transform_indices = @transform_2, window_bounds = array<i64: 64, 128>}]} {
    %c0 = arith.constant 0 : index
    %c0_0 = arith.constant 0 : index
    %0 = vector.load %arg2[%c0, %c0_0] : memref<64x128xbf16, #tpu.memory_space<vmem>>, vector<64x128xbf16>
    %1 = arith.extf %0 : vector<64x128xbf16> to vector<64x128xf32>
    %c0_1 = arith.constant 0 : index
    %c0_2 = arith.constant 0 : index
    %2 = vector.load %arg3[%c0_1, %c0_2] : memref<64x1xf32, #tpu.memory_space<vmem>>, vector<64x1xf32>
    %3 = vector.broadcast %2 : vector<64x1xf32> to vector<64x128xf32>
    %4 = arith.subf %1, %3 : vector<64x128xf32>
    %c0_3 = arith.constant 0 : index
    %c0_4 = arith.constant 0 : index
    %5 = vector.load %arg4[%c0_3, %c0_4] : memref<64x128xf32, #tpu.memory_space<vmem>>, vector<64x128xf32>
    tpu.vector_store %arg4[%c0_3, %c0_4], %4 {strides = array<i32>} : memref<64x128xf32, #tpu.memory_space<vmem>>, vector<64x128xf32>,
    return
  }
  func.func @transform_0(%arg0: i32, %arg1: i32) -> (i32, i32) {
    %c0_i32 = arith.constant 0 : i32
    return %arg0, %arg1 : i32, i32
  }
  func.func @transform_1(%arg0: i32, %arg1: i32) -> (i32, i32) {
    %c0_i32 = arith.constant 0 : i32
    %c0_i32_0 = arith.constant 0 : i32
    return %arg0, %c0_i32 : i32, i32
  }
  func.func @transform_2(%arg0: i32, %arg1: i32) -> (i32, i32) {
    %c0_i32 = arith.constant 0 : i32
    return %arg0, %arg1 : i32, i32
  }
}

</mosaic_0001>

<bundles_post_ra>
// kernel: rnn_model_forward.11
= control target key start
LH: loop header
LB: loop body
LE: loop exit
PB: predicated region body
PF: predicated region fallthrough
CT: control target
= control target key end

     0   :  { %v117_v0 = vmov 0   ;;  %s193_s1 = inlined_call_operand.vmem [shape: f32[64,1], index: 1, kind: input, shape index: {}]   ;;  %s194_s0 = inlined_call_operand.vmem [shape: bf16[64,128], index: 0, kind: input, shape index: {}]   ;;  %s195_s2 = inlined_call_operand.vmem [shape: f32[64,128], index: 2, kind: output, shape index: {}]  }
   0x1   :  { %116 = vset.pattern.permute.xlu1 %v117_v0  ;;  %115 = vset.pattern.permute.xlu0 %v117_v0  ;;  %v29_v1 = vld [vmem:[%s193_s1 + $0x10] sm:$0xff]  ;;  %v27_v2 = vld [vmem:[%s193_s1] sm:$0xff]  ;;  %v30_v3 = vld [vmem:[%s193_s1 + $0x18] sm:$0xff] }
   0x2   :  { %47 = vperm.xlu1 %116, %v29_v1   ;;  %37 = vperm.xlu0 %115, %v27_v2   ;;  %v28_v4 = vld [vmem:[%s193_s1 + $0x8] sm:$0xff]  ;;  %v31_v6 = vld [vmem:[%s193_s1 + $0x20] sm:$0xff]  ;;  %v34_v7 = vld [vmem:[%s193_s1 + $0x38] sm:$0xff] }
   0x3   :  { %v32_v5 = vld [vmem:[%s193_s1 + $0x28] sm:$0xff]  ;;  %v33_v8 = vld [vmem:[%s193_s1 + $0x30] sm:$0xff]  ;;  %v96_v10 = vld [vmem:[%s194_s0] sm:$0xff]  }
   0x4   :  { %v111_v9 = vld [vmem:[%s194_s0 + $0x8] sm:$0xff]   ;;  %v97_v12 = vunpack.c.l.bf16 %v96_v10  ;;  %v98_v18 = vunpack.c.h.bf16 %v96_v10  ;;  %v112_v19 = vld [vmem:[%s194_s0 + $0x10] sm:$0xff]   ;;  %v113_v26 = vld [vmem:[%s194_s0 + $0x18] sm:$0xff]  }
   0x5   :  { %v101_v11 = vunpack.c.l.bf16 %v111_v9  ;;  %v102_v17 = vunpack.c.h.bf16 %v111_v9  ;;  %v106_v24 = vunpack.c.h.bf16 %v112_v19  ;;  %v105_v25 = vunpack.c.l.bf16 %v112_v19 }
   0x6   :  { %52 = vperm.xlu1 %116, %v30_v3   ;;  %42 = vperm.xlu0 %115, %v28_v4   ;;  %v110_v31 = vunpack.c.h.bf16 %v113_v26  ;;  %v109_v32 = vunpack.c.l.bf16 %v113_v26 }
   0xa   :  { %62 = vperm.xlu1 %116, %v32_v5   ;;  %57 = vperm.xlu0 %115, %v31_v6  }
   0xe   :  { %72 = vperm.xlu1 %116, %v34_v7   ;;  %67 = vperm.xlu0 %115, %v33_v8  }
  0x81   :  { %v48_v13 = vpop.permute.xlu1 %47  ;;  %v38_v14 = vpop.permute.xlu0 %37 }
  0x82   :  { %v77_v15 = vsub.f32 %v101_v11, %v48_v13  ;;  %v75_v16 = vsub.f32 %v97_v12, %v38_v14 }
  0x84   :  { %85 = vst [vmem:[%s195_s2 + $0x10] sm:$0xff] %v77_v15  ;;  %83 = vst [vmem:[%s195_s2] sm:$0xff] %v75_v16 }
  0x85   :  { %v53_v20 = vpop.permute.xlu1 %52  ;;  %v43_v21 = vpop.permute.xlu0 %42 }
  0x86   :  { %v78_v22 = vsub.f32 %v102_v17, %v53_v20  ;;  %v76_v23 = vsub.f32 %v98_v18, %v43_v21 }
  0x88   :  { %86 = vst [vmem:[%s195_s2 + $0x18] sm:$0xff] %v78_v22  ;;  %84 = vst [vmem:[%s195_s2 + $0x8] sm:$0xff] %v76_v23 }
  0x89   :  { %v63_v27 = vpop.permute.xlu1 %62  ;;  %v58_v28 = vpop.permute.xlu0 %57 }
  0x8a   :  { %v80_v29 = vsub.f32 %v106_v24, %v63_v27  ;;  %v79_v30 = vsub.f32 %v105_v25, %v58_v28 }
  0x8c   :  { %88 = vst [vmem:[%s195_s2 + $0x28] sm:$0xff] %v80_v29  ;;  %87 = vst [vmem:[%s195_s2 + $0x20] sm:$0xff] %v79_v30 }
  0x8d   :  { %v73_v33 = vpop.permute.xlu1 %72  ;;  %v68_v34 = vpop.permute.xlu0 %67 }
  0x8e   :  { %v82_v35 = vsub.f32 %v110_v31, %v73_v33  ;;  %v81_v36 = vsub.f32 %v109_v32, %v68_v34 }
  0x90   :  { %90 = vst [vmem:[%s195_s2 + $0x38] sm:$0xff] %v82_v35  ;;  %89 = vst [vmem:[%s195_s2 + $0x30] sm:$0xff] %v81_v36 }

// kernel: rnn_model_forward.6
= control target key start
LH: loop header
LB: loop body
LE: loop exit
PB: predicated region body
PF: predicated region fallthrough
CT: control target
= control target key end

     0   :  { %s414_s1 = inlined_call_operand.vmem [shape: bf16[128,128], index: 1, kind: input, shape index: {}]   ;;  %s415_s0 = inlined_call_operand.vmem [shape: bf16[64,128], index: 0, kind: input, shape index: {}]   ;;  %s416_s2 = inlined_call_operand.vmem [shape: f32[1,128], index: 2, kind: input, shape index: {}]   ;;  %s417_s3 = inlined_call_operand.vmem [shape: bf16[64,128], index: 3, kind: output, shape index: {}]  }
   0x1   :  { %v331_v0 = vld [vmem:[%s414_s1] sm:$0xff]   ;;  %v332_v1 = vld [vmem:[%s414_s1 + $0x8] sm:$0xff]   ;;  %v333_v2 = vld [vmem:[%s414_s1 + $0x10] sm:$0xff]  }
   0x2   :  { %291 = vmatprep.subr.bf16.mxu0 %v331_v0  ;;  %315 = vmatprep.subr.bf16.mxu1 %v331_v0  ;;  %v334_v3 = vld [vmem:[%s414_s1 + $0x18] sm:$0xff]   ;;  %v339_v4 = vld [vmem:[%s415_s0] sm:$0xff]   ;;  %v340_v5 = vld [vmem:[%s415_s0 + $0x10] sm:$0xff]  }
   0x3   :  { %292 = vmatpush3.bf16.msra.mxu0 %v331_v0  ;;  %323 = vmatpush3.bf16.msra.mxu1 %v331_v0  ;;  %v335_v6 = vld [vmem:[%s414_s1 + $0x20] sm:$0xff]   ;;  %v336_v7 = vld [vmem:[%s414_s1 + $0x28] sm:$0xff]   ;;  %v337_v8 = vld [vmem:[%s414_s1 + $0x30] sm:$0xff]  }
   0x4   :  { %293 = vmatprep.subr.bf16.mxu0 %v332_v1  ;;  %316 = vmatprep.subr.bf16.mxu1 %v332_v1  ;;  %v338_v9 = vld [vmem:[%s414_s1 + $0x38] sm:$0xff]   ;;  %v341_v10 = vld [vmem:[%s415_s0 + $0x8] sm:$0xff]   ;;  %v227_v13 = vld [vmem:[%s416_s2] ss:$0 sm:$0xff] }
   0x5   :  { %307 = vmatprep.mubr.bf16.mxu0 %v339_v4  ;;  %311 = vmatprep.mubr.bf16.mxu1 %v340_v5  ;;  %v342_v11 = vld [vmem:[%s415_s0 + $0x18] sm:$0xff]  }
   0x7   :  { %294 = vmatpush3.bf16.msra.mxu0 %v332_v1  ;;  %324 = vmatpush3.bf16.msra.mxu1 %v332_v1 }
   0x8   :  { %295 = vmatprep.subr.bf16.mxu0 %v333_v2  ;;  %317 = vmatprep.subr.bf16.mxu1 %v333_v2 }
   0xb   :  { %296 = vmatpush3.bf16.msra.mxu0 %v333_v2  ;;  %325 = vmatpush3.bf16.msra.mxu1 %v333_v2 }
   0xc   :  { %297 = vmatprep.subr.bf16.mxu0 %v334_v3  ;;  %318 = vmatprep.subr.bf16.mxu1 %v334_v3 }
   0xf   :  { %298 = vmatpush3.bf16.msra.mxu0 %v334_v3  ;;  %326 = vmatpush3.bf16.msra.mxu1 %v334_v3 }
  0x10   :  { %299 = vmatprep.subr.bf16.mxu0 %v335_v6  ;;  %319 = vmatprep.subr.bf16.mxu1 %v335_v6 }
  0x13   :  { %300 = vmatpush3.bf16.msra.mxu0 %v335_v6  ;;  %327 = vmatpush3.bf16.msra.mxu1 %v335_v6 }
  0x14   :  { %301 = vmatprep.subr.bf16.mxu0 %v336_v7  ;;  %320 = vmatprep.subr.bf16.mxu1 %v336_v7 }
  0x17   :  { %302 = vmatpush3.bf16.msra.mxu0 %v336_v7  ;;  %328 = vmatpush3.bf16.msra.mxu1 %v336_v7 }
  0x18   :  { %303 = vmatprep.subr.bf16.mxu0 %v337_v8  ;;  %321 = vmatprep.subr.bf16.mxu1 %v337_v8 }
  0x1b   :  { %304 = vmatpush3.bf16.msra.mxu0 %v337_v8  ;;  %329 = vmatpush3.bf16.msra.mxu1 %v337_v8 }
  0x1c   :  { %305 = vmatprep.subr.bf16.mxu0 %v338_v9  ;;  %322 = vmatprep.subr.bf16.mxu1 %v338_v9 }
  0x1f   :  { %306 = vmatpush3.bf16.msra.mxu0 %v338_v9  ;;  %330 = vmatpush3.bf16.msra.mxu1 %v338_v9 }
  0x22   :  { %308 = vmatmul.mubr.bf16.vlgmr.msra.gmra.mrb[0].mxu0 %v341_v10  ;;  %312 = vmatmul.mubr.bf16.vlgmr.msra.gmra.mrb[0].mxu1 %v342_v11 }
  0xf5   :  { %v309_v12 = vpop.f32.mrb[0].mxu0  ;;  %v313_v14 = vpop.f32.mrb[0].mxu1 }
  0xf6   :  { %v152_v15 = vpop.f32.mrb[1].mxu0  ;;  %v168_v16 = vpop.f32.mrb[1].mxu1  ;;  %v161_v19 = vadd.f32 %v309_v12, %v227_v13  ;;  %v177_v20 = vadd.f32 %v313_v14, %v227_v13 }
  0xf7   :  { %v310_v17 = vpop.f32.mrb[2].mxu0  ;;  %v314_v18 = vpop.f32.mrb[2].mxu1  ;;  %v153_v25 = vadd.f32 %v227_v13, %v152_v15  ;;  %v169_v26 = vadd.f32 %v227_v13, %v168_v16 }
  0xf8   :  { %v164_v21 = vadd.f32 %v310_v17, %v227_v13  ;;  %v180_v22 = vadd.f32 %v314_v18, %v227_v13  ;;  %v155_v23 = vpop.f32.mrb[3].mxu0  ;;  %v171_v24 = vpop.f32.mrb[3].mxu1 }
  0xf9   :  { %v156_v27 = vadd.f32 %v227_v13, %v155_v23  ;;  %v172_v28 = vadd.f32 %v227_v13, %v171_v24 }
  0xfa   :  { %v264_v29 = vpack.c.bf16 %v164_v21, %v161_v19  ;;  %v274_v30 = vpack.c.bf16 %v180_v22, %v177_v20 }
  0xfb   :  { %v259_v31 = vpack.c.bf16 %v156_v27, %v153_v25  ;;  %v269_v32 = vpack.c.bf16 %v172_v28, %v169_v26 }
  0xfc   :  { %276 = vst [vmem:[%s417_s3 + $0x8] sm:$0xff] %v264_v29   ;;  %278 = vst [vmem:[%s417_s3 + $0x18] sm:$0xff] %v274_v30  }
  0xfd   :  { %260 = vst [vmem:[%s417_s3] sm:$0xff] %v259_v31   ;;  %277 = vst [vmem:[%s417_s3 + $0x10] sm:$0xff] %v269_v32  }

// kernel: rnn_model_forward.10
= control target key start
LH: loop header
LB: loop body
LE: loop exit
PB: predicated region body
PF: predicated region fallthrough
CT: control target
= control target key end

     0   :  { %vm21_vm0 = vcmask 7168   ;;  %v651_v12 = vmov -inf   ;;  %v652_v34 = vmov 0   ;;  %v653_v35 = vmov 0.0   ;;  %s930_s1 = inlined_call_operand.vmem [shape: bf16[128,128], index: 1, kind: input, shape index: {}]   ;;  %s931_s0 = inlined_call_operand.vmem [shape: bf16[64,128], index: 0, kind: input, shape index: {}]   ;;  %s932_s2 = inlined_call_operand.vmem [shape: f32[1,128], index: 2, kind: input, shape index: {}]   ;;  %s933_s3 = inlined_call_operand.vmem [shape: bf16[64,128], index: 3, kind: output, shape index: {0}]   ;;  %s934_s4 = inlined_call_operand.vmem [shape: f32[64,1], index: 4, kind: output, shape index: {1}]  }
   0x1   :  { %v591_v0 = vld [vmem:[%s930_s1] sm:$0xff]   ;;  %v592_v1 = vld [vmem:[%s930_s1 + $0x8] sm:$0xff]   ;;  %v593_v2 = vld [vmem:[%s930_s1 + $0x10] sm:$0xff]   ;;  %24 = vst.msk [vmem:[#allocation2 + $0x10] sm:$0xff] %vm21_vm0, %v651_v12  ;;  %590 = vset.pattern.permute.xlu1 %v652_v34  ;;  %589 = vset.pattern.permute.xlu0 %v652_v34 }
   0x2   :  { %546 = vmatprep.subr.bf16.mxu0 %v591_v0  ;;  %570 = vmatprep.subr.bf16.mxu1 %v591_v0  ;;  %v594_v3 = vld [vmem:[%s930_s1 + $0x18] sm:$0xff]   ;;  %v599_v4 = vld [vmem:[%s931_s0] sm:$0xff]   ;;  %v601_v5 = vld [vmem:[%s931_s0 + $0x10] sm:$0xff]   ;;  %22 = vst.msk [vmem:[#allocation2] sm:$0xff] %vm21_vm0, %v651_v12 }
   0x3   :  { %547 = vmatpush3.bf16.msra.mxu0 %v591_v0  ;;  %578 = vmatpush3.bf16.msra.mxu1 %v591_v0  ;;  %v595_v6 = vld [vmem:[%s930_s1 + $0x20] sm:$0xff]   ;;  %v596_v7 = vld [vmem:[%s930_s1 + $0x28] sm:$0xff]   ;;  %v597_v8 = vld [vmem:[%s930_s1 + $0x30] sm:$0xff]   ;;  %23 = vst.msk [vmem:[#allocation2 + $0x8] sm:$0xff] %vm21_vm0, %v651_v12 }
   0x4   :  { %548 = vmatprep.subr.bf16.mxu0 %v592_v1  ;;  %571 = vmatprep.subr.bf16.mxu1 %v592_v1  ;;  %v598_v9 = vld [vmem:[%s930_s1 + $0x38] sm:$0xff]   ;;  %v600_v10 = vld [vmem:[%s931_s0 + $0x8] sm:$0xff]   ;;  %25 = vst.msk [vmem:[#allocation2 + $0x18] sm:$0xff] %vm21_vm0, %v651_v12  ;;  %26 = vst.msk [vmem:[#allocation2 + $0x20] sm:$0xff] %vm21_vm0, %v651_v12 }
   0x5   :  { %562 = vmatprep.mubr.bf16.mxu0 %v599_v4  ;;  %566 = vmatprep.mubr.bf16.mxu1 %v601_v5  ;;  %v602_v11 = vld [vmem:[%s931_s0 + $0x18] sm:$0xff]   ;;  %27 = vst.msk [vmem:[#allocation2 + $0x28] sm:$0xff] %vm21_vm0, %v651_v12  ;;  %28 = vst.msk [vmem:[#allocation2 + $0x30] sm:$0xff] %vm21_vm0, %v651_v12  ;;  %v482_v13 = vld [vmem:[%s932_s2] ss:$0 sm:$0xff] }
   0x6   :  { %29 = vst.msk [vmem:[#allocation2 + $0x38] sm:$0xff] %vm21_vm0, %v651_v12  ;;  %32 = vst.msk [vmem:[#allocation3 + $0x10] sm:$0xff] %vm21_vm0, %v653_v35 }
   0x7   :  { %549 = vmatpush3.bf16.msra.mxu0 %v592_v1  ;;  %579 = vmatpush3.bf16.msra.mxu1 %v592_v1  ;;  %30 = vst.msk [vmem:[#allocation3] sm:$0xff] %vm21_vm0, %v653_v35  ;;  %31 = vst.msk [vmem:[#allocation3 + $0x8] sm:$0xff] %vm21_vm0, %v653_v35 }
   0x8   :  { %550 = vmatprep.subr.bf16.mxu0 %v593_v2  ;;  %572 = vmatprep.subr.bf16.mxu1 %v593_v2  ;;  %33 = vst.msk [vmem:[#allocation3 + $0x18] sm:$0xff] %vm21_vm0, %v653_v35  ;;  %34 = vst.msk [vmem:[#allocation3 + $0x20] sm:$0xff] %vm21_vm0, %v653_v35  ;;  %v778_v36 = vld [vmem:[#allocation2 + $0x10] sm:$0xff] }
   0x9   :  { %35 = vst.msk [vmem:[#allocation3 + $0x28] sm:$0xff] %vm21_vm0, %v653_v35  ;;  %36 = vst.msk [vmem:[#allocation3 + $0x30] sm:$0xff] %vm21_vm0, %v653_v35  ;;  %v780_v37 = vld [vmem:[#allocation2] sm:$0xff] }
   0xa   :  { %37 = vst.msk [vmem:[#allocation3 + $0x38] sm:$0xff] %vm21_vm0, %v653_v35  ;;  %v814_v52 = vld [vmem:[#allocation2 + $0x8] sm:$0xff] }
   0xb   :  { %551 = vmatpush3.bf16.msra.mxu0 %v593_v2  ;;  %580 = vmatpush3.bf16.msra.mxu1 %v593_v2  ;;  %v788_v42 = vld [vmem:[#allocation2 + $0x18] sm:$0xff]  ;;  %v795_v44 = vld [vmem:[#allocation2 + $0x20] sm:$0xff] }
   0xc   :  { %552 = vmatprep.subr.bf16.mxu0 %v594_v3  ;;  %573 = vmatprep.subr.bf16.mxu1 %v594_v3  ;;  %v808_v50 = vld [vmem:[#allocation2 + $0x28] sm:$0xff]  ;;  %v832_v60 = vld [vmem:[#allocation2 + $0x30] sm:$0xff] }
   0xd   :  { %v826_v58 = vld [vmem:[#allocation2 + $0x38] sm:$0xff] }
   0xf   :  { %553 = vmatpush3.bf16.msra.mxu0 %v594_v3  ;;  %581 = vmatpush3.bf16.msra.mxu1 %v594_v3 }
  0x10   :  { %554 = vmatprep.subr.bf16.mxu0 %v595_v6  ;;  %574 = vmatprep.subr.bf16.mxu1 %v595_v6 }
  0x13   :  { %555 = vmatpush3.bf16.msra.mxu0 %v595_v6  ;;  %582 = vmatpush3.bf16.msra.mxu1 %v595_v6 }
  0x14   :  { %556 = vmatprep.subr.bf16.mxu0 %v596_v7  ;;  %575 = vmatprep.subr.bf16.mxu1 %v596_v7 }
  0x17   :  { %557 = vmatpush3.bf16.msra.mxu0 %v596_v7  ;;  %583 = vmatpush3.bf16.msra.mxu1 %v596_v7 }
  0x18   :  { %558 = vmatprep.subr.bf16.mxu0 %v597_v8  ;;  %576 = vmatprep.subr.bf16.mxu1 %v597_v8 }
  0x1b   :  { %559 = vmatpush3.bf16.msra.mxu0 %v597_v8  ;;  %584 = vmatpush3.bf16.msra.mxu1 %v597_v8 }
  0x1c   :  { %560 = vmatprep.subr.bf16.mxu0 %v598_v9  ;;  %577 = vmatprep.subr.bf16.mxu1 %v598_v9 }
  0x1f   :  { %561 = vmatpush3.bf16.msra.mxu0 %v598_v9  ;;  %585 = vmatpush3.bf16.msra.mxu1 %v598_v9 }
  0x22   :  { %563 = vmatmul.mubr.bf16.vlgmr.msra.gmra.mrb[0].mxu0 %v600_v10  ;;  %567 = vmatmul.mubr.bf16.vlgmr.msra.gmra.mrb[0].mxu1 %v602_v11 }
  0xf5   :  { %v564_v14 = vpop.f32.mrb[0].mxu0  ;;  %v568_v15 = vpop.f32.mrb[0].mxu1 }
  0xf6   :  { %v726_v16 = vadd.f32 %v564_v14, %v482_v13  ;;  %v175_v17 = vpop.f32.mrb[1].mxu0  ;;  %v728_v18 = vadd.f32 %v568_v15, %v482_v13  ;;  %v191_v19 = vpop.f32.mrb[1].mxu1 }
  0xf7   :  { %v730_v20 = vadd.f32 %v482_v13, %v175_v17  ;;  %v565_v21 = vpop.f32.mrb[2].mxu0  ;;  %v732_v22 = vadd.f32 %v482_v13, %v191_v19  ;;  %v569_v23 = vpop.f32.mrb[2].mxu1 }
  0xf8   :  { %v734_v24 = vadd.f32 %v565_v21, %v482_v13  ;;  %v736_v25 = vadd.f32 %v569_v23, %v482_v13  ;;  %258 = vmax.xlane.f32.xlu1 %v726_v16  ;;  %v178_v26 = vpop.f32.mrb[3].mxu0  ;;  %v194_v27 = vpop.f32.mrb[3].mxu1 }
  0xf9   :  { %v739_v28 = vadd.f32 %v482_v13, %v178_v26  ;;  %v741_v29 = vadd.f32 %v482_v13, %v194_v27  ;;  %254 = vmax.xlane.f32.xlu0 %v730_v20 }
  0xfa   :  { %v519_v30 = vpack.c.bf16 %v734_v24, %v726_v16  ;;  %v529_v31 = vpack.c.bf16 %v736_v25, %v728_v18 }
  0xfb   :  { %v514_v32 = vpack.c.bf16 %v739_v28, %v730_v20  ;;  %v524_v33 = vpack.c.bf16 %v741_v29, %v732_v22 }
  0xfc   :  { %531 = vst [vmem:[%s933_s3 + $0x8] sm:$0xff] %v519_v30   ;;  %533 = vst [vmem:[%s933_s3 + $0x18] sm:$0xff] %v529_v31   ;;  %260 = vmax.xlane.f32.xlu1 %v734_v24 }
  0xfd   :  { %515 = vst [vmem:[%s933_s3] sm:$0xff] %v514_v32   ;;  %532 = vst [vmem:[%s933_s3 + $0x10] sm:$0xff] %v524_v33   ;;  %262 = vmax.xlane.f32.xlu0 %v732_v22 }
 0x100   :  { %264 = vmax.xlane.f32.xlu1 %v741_v29 }
 0x101   :  { %256 = vmax.xlane.f32.xlu0 %v739_v28 }
 0x104   :  { %268 = vmax.xlane.f32.xlu1 %v736_v25 }
 0x105   :  { %266 = vmax.xlane.f32.xlu0 %v728_v18 }
 0x185   :  { %v259_v38 = vpop.xlane.xlu1 %258 }
 0x186   :  { %v783_v39 = vmax.f32 %v778_v36, %v259_v38  ;;  %v255_v40 = vpop.xlane.xlu0 %254 }
 0x187   :  { %v786_v41 = vmax.f32 %v780_v37, %v255_v40 }
 0x188   :  { %v288_v43 = vsub.f32 %v778_v36, %v783_v39  ;;  %417 = vst.msk [vmem:[#allocation2 + $0x10] sm:$0xff] %vm21_vm0, %v783_v39  ;;  %330 = vperm.xlu1 %590, %v783_v39  }
 0x189   :  { %v286_v45 = vsub.f32 %v780_v37, %v786_v41  ;;  %415 = vst.msk [vmem:[#allocation2] sm:$0xff] %vm21_vm0, %v786_v41  ;;  %v261_v46 = vpop.xlane.xlu1 %260  ;;  %320 = vperm.xlu0 %589, %v786_v41  }
 0x18a   :  { %v803_v47 = vmax.f32 %v788_v42, %v261_v46  ;;  %v263_v48 = vpop.xlane.xlu0 %262 }
 0x18b   :  { %v806_v49 = vmax.f32 %v795_v44, %v263_v48  ;;  %v280_v48 = vld [vmem:[#allocation3 + $0x10] sm:$0xff] }
 0x18c   :  { %v289_v51 = vsub.f32 %v788_v42, %v803_v47  ;;  %418 = vst.msk [vmem:[#allocation2 + $0x18] sm:$0xff] %vm21_vm0, %v803_v47 }
 0x18d   :  { %v290_v53 = vsub.f32 %v795_v44, %v806_v49  ;;  %419 = vst.msk [vmem:[#allocation2 + $0x20] sm:$0xff] %vm21_vm0, %v806_v49  ;;  %v265_v54 = vpop.xlane.xlu1 %264 }
 0x18e   :  { %v821_v55 = vmax.f32 %v808_v50, %v265_v54  ;;  %v257_v56 = vpop.xlane.xlu0 %256  ;;  %v300_v37 = vmul.f32 1.442695, %v289_v51 }
 0x18f   :  { %v824_v57 = vmax.f32 %v814_v52, %v257_v56  ;;  %v278_v56 = vld [vmem:[#allocation3] sm:$0xff] }
 0x190   :  { %v291_v59 = vsub.f32 %v808_v50, %v821_v55  ;;  %420 = vst.msk [vmem:[#allocation2 + $0x28] sm:$0xff] %vm21_vm0, %v821_v55 }
 0x191   :  { %v287_v61 = vsub.f32 %v814_v52, %v824_v57  ;;  %416 = vst.msk [vmem:[#allocation2 + $0x8] sm:$0xff] %vm21_vm0, %v824_v57  ;;  %v269_v62 = vpop.xlane.xlu1 %268 }
 0x192   :  { %v839_v63 = vmax.f32 %v826_v58, %v269_v62  ;;  %v267_v0 = vpop.xlane.xlu0 %266  ;;  %v302_v62 = vmul.f32 1.442695, %v290_v53 }
 0x193   :  { %v842_v1 = vmax.f32 %v832_v60, %v267_v0  ;;  %v296_v41 = vmul.f32 1.442695, %v287_v61 }
 0x194   :  { %v293_v2 = vsub.f32 %v826_v58, %v839_v63  ;;  %422 = vst.msk [vmem:[#allocation2 + $0x38] sm:$0xff] %vm21_vm0, %v839_v63 }
 0x195   :  { %v292_v3 = vsub.f32 %v832_v60, %v842_v1  ;;  %421 = vst.msk [vmem:[#allocation2 + $0x30] sm:$0xff] %vm21_vm0, %v842_v1  ;;  %350 = vperm.xlu1 %590, %v842_v1  }
 0x196   :  { %v308_v51 = vmul.f32 1.442695, %v293_v2  ;;  %v426_v2 = vld [vmem:[#allocation2] sm:$0xff] }
 0x197   :  { %v306_v42 = vmul.f32 1.442695, %v292_v3  ;;  %v279_v3 = vld [vmem:[#allocation3 + $0x8] sm:$0xff] }
 0x199   :  { %340 = vperm.xlu1 %590, %v806_v49   ;;  %v282_v49 = vld [vmem:[#allocation3 + $0x20] sm:$0xff] }
 0x19d   :  { %335 = vperm.xlu1 %590, %v803_v47  }
 0x1a1   :  { %325 = vperm.xlu1 %590, %v824_v57  }
 0x1a5   :  { %345 = vperm.xlu1 %590, %v821_v55   ;;  %v281_v55 = vld [vmem:[#allocation3 + $0x18] sm:$0xff] }
 0x1a9   :  { %355 = vperm.xlu1 %590, %v839_v63  }
 0x207   :  { %v331_v4 = vpop.permute.xlu1 %330 }
 0x208   :  { %v360_v5 = vsub.f32 %v726_v16, %v331_v4  ;;  %v321_v6 = vpop.permute.xlu0 %320 }
 0x209   :  { %v358_v7 = vsub.f32 %v730_v20, %v321_v6 }
 0x20a   :  { %v370_v8 = vmul.f32 1.442695, %v360_v5 }
 0x20b   :  { %v366_v9 = vmul.f32 1.442695, %v358_v7 }
 0x20c   :  { %603 = vpow2.f32 %v370_v8 }
 0x20d   :  { %605 = vpow2.f32 %v366_v9 }
 0x214   :  { %v351_v10 = vpop.permute.xlu1 %350 }
 0x215   :  { %v364_v20 = vsub.f32 %v728_v18, %v351_v10  ;;  %v428_v10 = vld [vmem:[#allocation2 + $0x10] sm:$0xff] }
 0x216   :  { %v604_v11 = vpop.eup %603 }
 0x217   :  { %v606_v12 = vpop.eup %605  ;;  %386 = vadd.xlane.f32.xlu0 %v604_v11  ;;  %v378_v27 = vmul.f32 1.442695, %v364_v20 }
 0x218   :  { %v341_v13 = vpop.permute.xlu1 %340  ;;  %382 = vadd.xlane.f32.xlu1 %v606_v12 }
 0x219   :  { %v362_v14 = vsub.f32 %v732_v22, %v341_v13 }
 0x21b   :  { %v374_v15 = vmul.f32 1.442695, %v362_v14 }
 0x21c   :  { %v336_v17 = vpop.permute.xlu1 %335 }
 0x21d   :  { %607 = vpow2.f32 %v374_v15  ;;  %v361_v16 = vsub.f32 %v734_v24, %v336_v17  ;;  %v283_v17 = vld [vmem:[#allocation3 + $0x28] sm:$0xff] }
 0x21f   :  { %v372_v19 = vmul.f32 1.442695, %v361_v16  ;;  %v284_v16 = vld [vmem:[#allocation3 + $0x30] sm:$0xff] }
 0x220   :  { %v326_v21 = vpop.permute.xlu1 %325 }
 0x221   :  { %609 = vpow2.f32 %v372_v19  ;;  %v359_v23 = vsub.f32 %v739_v28, %v326_v21 }
 0x223   :  { %v368_v26 = vmul.f32 1.442695, %v359_v23 }
 0x224   :  { %v346_v30 = vpop.permute.xlu1 %345 }
 0x225   :  { %611 = vpow2.f32 %v368_v26  ;;  %v363_v31 = vsub.f32 %v741_v29, %v346_v30  ;;  %v298_v29 = vmul.f32 1.442695, %v288_v43  ;;  %v304_v43 = vmul.f32 1.442695, %v291_v59 }
 0x226   :  { %613 = vpow2.f32 %v378_v27 }
 0x227   :  { %v608_v32 = vpop.eup %607  ;;  %v376_v22 = vmul.f32 1.442695, %v363_v31  ;;  %v285_v31 = vld [vmem:[#allocation3 + $0x38] sm:$0xff] }
 0x228   :  { %390 = vadd.xlane.f32.xlu0 %v608_v32  ;;  %v356_v33 = vpop.permute.xlu1 %355 }
 0x229   :  { %615 = vpow2.f32 %v376_v22  ;;  %v365_v24 = vsub.f32 %v736_v25, %v356_v33  ;;  %v294_v25 = vmul.f32 1.442695, %v286_v45 }
 0x22b   :  { %v610_v34 = vpop.eup %609  ;;  %v380_v18 = vmul.f32 1.442695, %v365_v24 }
 0x22c   :  { %388 = vadd.xlane.f32.xlu1 %v610_v34 }
 0x22d   :  { %617 = vpow2.f32 %v380_v18 }
 0x22e   :  { %619 = vpow2.f32 %v298_v29 }
 0x22f   :  { %v612_v35 = vpop.eup %611  ;;  %621 = vpow2.f32 %v294_v25  ;;  %v430_v25 = vld [vmem:[#allocation2 + $0x20] sm:$0xff] }
 0x230   :  { %384 = vadd.xlane.f32.xlu0 %v612_v35  ;;  %v614_v28 = vpop.eup %613  ;;  %623 = vpow2.f32 %v302_v62  ;;  %v429_v62 = vld [vmem:[#allocation2 + $0x18] sm:$0xff] }
 0x231   :  { %625 = vpow2.f32 %v300_v37 }
 0x232   :  { %627 = vpow2.f32 %v296_v41 }
 0x233   :  { %v616_v38 = vpop.eup %615 }
 0x234   :  { %394 = vadd.xlane.f32.xlu0 %v614_v28  ;;  %392 = vadd.xlane.f32.xlu1 %v616_v38 }
 0x237   :  { %v618_v40 = vpop.eup %617 }
 0x238   :  { %396 = vadd.xlane.f32.xlu1 %v618_v40  ;;  %v620_v46 = vpop.eup %619 }
 0x239   :  { %v622_v54 = vpop.eup %621  ;;  %v312_v0 = vmul.f32 %v620_v46, %v280_v48 }
 0x23a   :  { %v310_v5 = vmul.f32 %v622_v54, %v278_v56  ;;  %v624_v47 = vpop.eup %623 }
 0x23b   :  { %v314_v52 = vmul.f32 %v624_v47, %v282_v49  ;;  %v626_v50 = vpop.eup %625 }
 0x23c   :  { %v628_v59 = vpop.eup %627  ;;  %v313_v60 = vmul.f32 %v626_v50, %v281_v55 }
 0x23d   :  { %v311_v12 = vmul.f32 %v628_v59, %v279_v3 }
 0x2a4   :  { %v387_v4 = vpop.xlane.xlu0 %386 }
 0x2a5   :  { %v400_v6 = vadd.f32 %v387_v4, %v312_v0  ;;  %v383_v36 = vpop.xlane.xlu1 %382 }
 0x2a6   :  { %v398_v39 = vadd.f32 %v383_v36, %v310_v5 }
 0x2a7   :  { %409 = vst.msk [vmem:[#allocation3 + $0x10] sm:$0xff] %vm21_vm0, %v400_v6  ;;  %v427_v6 = vld [vmem:[#allocation2 + $0x8] sm:$0xff] }
 0x2a8   :  { %407 = vst.msk [vmem:[#allocation3] sm:$0xff] %vm21_vm0, %v398_v39 }
 0x2ae   :  { %v436_v44 = vld [vmem:[#allocation3 + $0x10] sm:$0xff] }
 0x2af   :  { %629 = vlog2.f32 %v436_v44  ;;  %v434_v45 = vld [vmem:[#allocation3] sm:$0xff] }
 0x2b0   :  { %631 = vlog2.f32 %v434_v45 }
 0x2b1   :  { %633 = vpow2.f32 %v304_v43  ;;  %v431_v43 = vld [vmem:[#allocation2 + $0x28] sm:$0xff] }
 0x2b2   :  { %635 = vpow2.f32 %v306_v42  ;;  %v432_v42 = vld [vmem:[#allocation2 + $0x30] sm:$0xff] }
 0x2b3   :  { %637 = vpow2.f32 %v308_v51 }
 0x2b5   :  { %v391_v53 = vpop.xlane.xlu0 %390 }
 0x2b6   :  { %v402_v57 = vadd.f32 %v391_v53, %v314_v52  ;;  %v433_v52 = vld [vmem:[#allocation2 + $0x38] sm:$0xff] }
 0x2b8   :  { %411 = vst.msk [vmem:[#allocation3 + $0x20] sm:$0xff] %vm21_vm0, %v402_v57 }
 0x2b9   :  { %v630_v61 = vpop.eup %629  ;;  %v389_v1 = vpop.xlane.xlu1 %388 }
 0x2ba   :  { %v632_v7 = vpop.eup %631  ;;  %v447_v8 = vmul.f32 0.6931472, %v630_v61  ;;  %v401_v9 = vadd.f32 %v389_v1, %v313_v60 }
 0x2bb   :  { %v443_v58 = vmul.f32 0.6931472, %v632_v7  ;;  %v634_v63 = vpop.eup %633 }
 0x2bc   :  { %v460_v11 = vadd.f32 %v447_v8, %v428_v10  ;;  %410 = vst.msk [vmem:[#allocation3 + $0x18] sm:$0xff] %vm21_vm0, %v401_v9  ;;  %v636_v13 = vpop.eup %635  ;;  %v315_v21 = vmul.f32 %v634_v63, %v283_v17 }
 0x2bd   :  { %v458_v14 = vadd.f32 %v443_v58, %v426_v2  ;;  %v385_v15 = vpop.xlane.xlu0 %384  ;;  %v316_v23 = vmul.f32 %v636_v13, %v284_v16  ;;  %v638_v26 = vpop.eup %637 }
 0x2be   :  { %468 = vst.msk [vmem:[%s934_s4 + $0x10] sm:$0xff] %vm21_vm0, %v460_v11  ;;  %v399_v19 = vadd.f32 %v385_v15, %v311_v12  ;;  %v317_v24 = vmul.f32 %v638_v26, %v285_v31 }
 0x2bf   :  { %466 = vst.msk [vmem:[%s934_s4] sm:$0xff] %vm21_vm0, %v458_v14  ;;  %v438_v20 = vld [vmem:[#allocation3 + $0x20] sm:$0xff] }
 0x2c0   :  { %639 = vlog2.f32 %v438_v20  ;;  %408 = vst.msk [vmem:[#allocation3 + $0x8] sm:$0xff] %vm21_vm0, %v399_v19 }
 0x2c1   :  { %v393_v27 = vpop.xlane.xlu1 %392  ;;  %v395_v30 = vpop.xlane.xlu0 %394 }
 0x2c2   :  { %v403_v32 = vadd.f32 %v393_v27, %v315_v21  ;;  %v404_v22 = vadd.f32 %v395_v30, %v316_v23 }
 0x2c3   :  { %v437_v33 = vld [vmem:[#allocation3 + $0x18] sm:$0xff] }
 0x2c4   :  { %641 = vlog2.f32 %v437_v33  ;;  %412 = vst.msk [vmem:[#allocation3 + $0x28] sm:$0xff] %vm21_vm0, %v403_v32  ;;  %413 = vst.msk [vmem:[#allocation3 + $0x30] sm:$0xff] %vm21_vm0, %v404_v22 }
 0x2c5   :  { %v397_v34 = vpop.xlane.xlu1 %396 }
 0x2c6   :  { %v405_v18 = vadd.f32 %v397_v34, %v317_v24 }
 0x2c7   :  { %v435_v35 = vld [vmem:[#allocation3 + $0x8] sm:$0xff] }
 0x2c8   :  { %643 = vlog2.f32 %v435_v35  ;;  %414 = vst.msk [vmem:[#allocation3 + $0x38] sm:$0xff] %vm21_vm0, %v405_v18 }
 0x2ca   :  { %v640_v28 = vpop.eup %639 }
 0x2cb   :  { %v451_v38 = vmul.f32 0.6931472, %v640_v28  ;;  %v439_v40 = vld [vmem:[#allocation3 + $0x28] sm:$0xff]  ;;  %v440_v29 = vld [vmem:[#allocation3 + $0x30] sm:$0xff] }
 0x2cc   :  { %645 = vlog2.f32 %v439_v40 }
 0x2cd   :  { %v462_v46 = vadd.f32 %v451_v38, %v430_v25  ;;  %647 = vlog2.f32 %v440_v29 }
 0x2ce   :  { %v642_v48 = vpop.eup %641 }
 0x2cf   :  { %470 = vst.msk [vmem:[%s934_s4 + $0x20] sm:$0xff] %vm21_vm0, %v462_v46  ;;  %v449_v54 = vmul.f32 0.6931472, %v642_v48  ;;  %v441_v56 = vld [vmem:[#allocation3 + $0x38] sm:$0xff] }
 0x2d0   :  { %649 = vlog2.f32 %v441_v56 }
 0x2d1   :  { %v461_v0 = vadd.f32 %v449_v54, %v429_v62 }
 0x2d2   :  { %v644_v4 = vpop.eup %643 }
 0x2d3   :  { %469 = vst.msk [vmem:[%s934_s4 + $0x18] sm:$0xff] %vm21_vm0, %v461_v0  ;;  %v445_v5 = vmul.f32 0.6931472, %v644_v4 }
 0x2d5   :  { %v459_v36 = vadd.f32 %v445_v5, %v427_v6 }
 0x2d6   :  { %v646_v39 = vpop.eup %645 }
 0x2d7   :  { %v648_v37 = vpop.eup %647  ;;  %467 = vst.msk [vmem:[%s934_s4 + $0x8] sm:$0xff] %vm21_vm0, %v459_v36  ;;  %v453_v41 = vmul.f32 0.6931472, %v646_v39 }
 0x2d8   :  { %v455_v44 = vmul.f32 0.6931472, %v648_v37 }
 0x2d9   :  { %v463_v45 = vadd.f32 %v453_v41, %v431_v43 }
 0x2da   :  { %v650_v47 = vpop.eup %649  ;;  %v464_v49 = vadd.f32 %v455_v44, %v432_v42 }
 0x2db   :  { %471 = vst.msk [vmem:[%s934_s4 + $0x28] sm:$0xff] %vm21_vm0, %v463_v45  ;;  %v457_v51 = vmul.f32 0.6931472, %v650_v47 }
 0x2dc   :  { %472 = vst.msk [vmem:[%s934_s4 + $0x30] sm:$0xff] %vm21_vm0, %v464_v49 }
 0x2dd   :  { %v465_v50 = vadd.f32 %v457_v51, %v433_v52 }
 0x2df   :  { %473 = vst.msk [vmem:[%s934_s4 + $0x38] sm:$0xff] %vm21_vm0, %v465_v50 }

// kernel: rnn_model_forward.7
= control target key start
LH: loop header
LB: loop body
LE: loop exit
PB: predicated region body
PF: predicated region fallthrough
CT: control target
= control target key end

     0   :  { %v1328_v0 = vmov 0.0   ;;  %vm1329_vm0 = vmmov 0   ;;  %s1661_s2 = inlined_call_operand.vmem [shape: bf16[128,128], index: 2, kind: input, shape index: {}]   ;;  %s1662_s1 = inlined_call_operand.vmem [shape: f32[8,128], index: 1, kind: input, shape index: {}]   ;;  %s1663_s0 = inlined_call_operand.vmem [shape: bf16[8,8,128], index: 0, kind: input, shape index: {}]   ;;  %s1664_s3 = inlined_call_operand.vmem [shape: bf16[8,8,128], index: 3, kind: output, shape index: {}]  }
   0x1   :  { %1086 = vmatprep.subr.bf16.mxu0 %v1328_v0  ;;  %v1248_v1 = vld [vmem:[%s1661_s2] sm:$0xff]   ;;  %1102 = vmatprep.mubr.msk.bf16.mxu0 %vm1329_vm0, %v1328_v0  ;;  %v1249_v2 = vld [vmem:[%s1661_s2 + $0x8] sm:$0xff]   ;;  %v1250_v3 = vld [vmem:[%s1661_s2 + $0x10] sm:$0xff]  }
   0x2   :  { %1106 = vmatprep.subr.bf16.mxu1 %v1328_v0  ;;  %1122 = vmatprep.mubr.msk.bf16.mxu1 %vm1329_vm0, %v1328_v0  ;;  %v19_v4 = vld [vmem:[%s1662_s1] sm:$0xff]  ;;  %v1251_v7 = vld [vmem:[%s1661_s2 + $0x18] sm:$0xff]   ;;  %v1257_v8 = vld [vmem:[%s1661_s2 + $0x8] sm:$0xff]  }
   0x3   :  { %1087 = vmatpush3.bf16.msra.mxu0 %v1248_v1  ;;  %v20_v5 = vpack.c.bf16 %v19_v4, %v19_v4  ;;  %v1256_v6 = vld [vmem:[%s1661_s2] sm:$0xff]   ;;  %v1253_v10 = vld [vmem:[%s1661_s2 + $0x28] sm:$0xff]   ;;  %v1254_v11 = vld [vmem:[%s1661_s2 + $0x30] sm:$0xff]  }
   0x4   :  { %1088 = vmatprep.subr.bf16.mxu0 %v1328_v0  ;;  %1107 = vmatpush3.bf16.msra.mxu1 %v1256_v6  ;;  %v1252_v9 = vld [vmem:[%s1661_s2 + $0x20] sm:$0xff]   ;;  %v1255_v12 = vld [vmem:[%s1661_s2 + $0x38] sm:$0xff]   ;;  %v1258_v14 = vld [vmem:[%s1661_s2 + $0x10] sm:$0xff]  }
   0x5   :  { %21 = vst [vmem:[#allocation2] sm:$0xf] %v20_v5  ;;  %1108 = vmatprep.subr.bf16.mxu1 %v1328_v0  ;;  %v1259_v15 = vld [vmem:[%s1661_s2 + $0x18] sm:$0xff]   ;;  %v1260_v16 = vld [vmem:[%s1661_s2 + $0x20] sm:$0xff]   ;;  %v1261_v17 = vld [vmem:[%s1661_s2 + $0x28] sm:$0xff]  }
   0x6   :  { %v1262_v18 = vld [vmem:[%s1661_s2 + $0x30] sm:$0xff]   ;;  %v1263_v19 = vld [vmem:[%s1661_s2 + $0x38] sm:$0xff]   ;;  %v1264_v20 = vld [vmem:[%s1661_s2] sm:$0xff]  }
   0x7   :  { %1089 = vmatpush3.bf16.msra.mxu0 %v1249_v2  ;;  %v1265_v21 = vld [vmem:[%s1661_s2 + $0x8] sm:$0xff]   ;;  %v23_v22 = vld [vmem:[%s1663_s0] sm:$0xff]   ;;  %v1266_v32 = vld [vmem:[%s1661_s2 + $0x10] sm:$0xff]  }
   0x8   :  { %1090 = vmatprep.subr.bf16.mxu0 %v1328_v0  ;;  %1109 = vmatpush3.bf16.msra.mxu1 %v1257_v8  ;;  %v24_v23 = vunpack.c.l.bf16 %v23_v22  ;;  %v1267_v33 = vld [vmem:[%s1661_s2 + $0x18] sm:$0xff]   ;;  %v1268_v34 = vld [vmem:[%s1661_s2 + $0x20] sm:$0xff]   ;;  %v1269_v35 = vld [vmem:[%s1661_s2 + $0x28] sm:$0xff]   ;;  %v137_v40 = vunpack.c.h.bf16 %v23_v22 }
   0x9   :  { %1110 = vmatprep.subr.bf16.mxu1 %v1328_v0  ;;  %v1270_v36 = vld [vmem:[%s1661_s2 + $0x30] sm:$0xff]   ;;  %v1271_v37 = vld [vmem:[%s1661_s2 + $0x38] sm:$0xff]   ;;  %v1272_v38 = vld [vmem:[%s1661_s2] sm:$0xff]  }
   0xa   :  { %v1273_v39 = vld [vmem:[%s1661_s2 + $0x8] sm:$0xff]   ;;  %v1274_v49 = vld [vmem:[%s1661_s2 + $0x10] sm:$0xff]   ;;  %v1275_v50 = vld [vmem:[%s1661_s2 + $0x18] sm:$0xff]  }
   0xb   :  { %1091 = vmatpush3.bf16.msra.mxu0 %v1250_v3  ;;  %v1276_v51 = vld [vmem:[%s1661_s2 + $0x20] sm:$0xff]   ;;  %v1277_v52 = vld [vmem:[%s1661_s2 + $0x28] sm:$0xff]   ;;  %v1278_v53 = vld [vmem:[%s1661_s2 + $0x30] sm:$0xff]  }
   0xc   :  { %1092 = vmatprep.subr.bf16.mxu0 %v1328_v0  ;;  %v22_v13 = vld [vmem:[#allocation2] sm:$0xf]  ;;  %1111 = vmatpush3.bf16.msra.mxu1 %v1258_v14  ;;  %v1279_v54 = vld [vmem:[%s1661_s2 + $0x38] sm:$0xff]   ;;  %v1281_v56 = vld [vmem:[%s1661_s2 + $0x8] sm:$0xff]  }
   0xd   :  { %1112 = vmatprep.subr.bf16.mxu1 %v1328_v0  ;;  %v1280_v55 = vld [vmem:[%s1661_s2] sm:$0xff]   ;;  %v954_v57 = vld [vmem:[%s1663_s0 + $0x8] sm:$0xff]   ;;  %v1282_v4 = vld [vmem:[%s1661_s2 + $0x10] sm:$0xff]  }
   0xe   :  { %v251_v58 = vunpack.c.l.bf16 %v954_v57  ;;  %v1283_v5 = vld [vmem:[%s1661_s2 + $0x18] sm:$0xff]   ;;  %v1284_v6 = vld [vmem:[%s1661_s2 + $0x20] sm:$0xff]   ;;  %v1286_v8 = vld [vmem:[%s1661_s2 + $0x30] sm:$0xff]  }
   0xf   :  { %1093 = vmatpush3.bf16.msra.mxu0 %v1251_v7  ;;  %v1285_v7 = vld [vmem:[%s1661_s2 + $0x28] sm:$0xff]   ;;  %v1291_v22 = vld [vmem:[%s1661_s2 + $0x18] sm:$0xff]  }
  0x10   :  { %1094 = vmatprep.subr.bf16.mxu0 %v1328_v0  ;;  %1113 = vmatpush3.bf16.msra.mxu1 %v1259_v15 }
  0x11   :  { %1114 = vmatprep.subr.bf16.mxu1 %v1328_v0 }
  0x13   :  { %1095 = vmatpush3.bf16.msra.mxu0 %v1252_v9  ;;  %v1287_v9 = vld [vmem:[%s1661_s2 + $0x38] sm:$0xff]  }
  0x14   :  { %1096 = vmatprep.subr.bf16.mxu0 %v1328_v0  ;;  %1115 = vmatpush3.bf16.msra.mxu1 %v1260_v16 }
  0x15   :  { %1116 = vmatprep.subr.bf16.mxu1 %v1328_v0 }
  0x17   :  { %1097 = vmatpush3.bf16.msra.mxu0 %v1253_v10  ;;  %v1288_v10 = vld [vmem:[%s1661_s2] sm:$0xff]  }
  0x18   :  { %1098 = vmatprep.subr.bf16.mxu0 %v1328_v0  ;;  %1117 = vmatpush3.bf16.msra.mxu1 %v1261_v17 }
  0x19   :  { %1118 = vmatprep.subr.bf16.mxu1 %v1328_v0 }
  0x1b   :  { %1099 = vmatpush3.bf16.msra.mxu0 %v1254_v11  ;;  %v1289_v11 = vld [vmem:[%s1661_s2 + $0x8] sm:$0xff]  }
  0x1c   :  { %1100 = vmatprep.subr.bf16.mxu0 %v1328_v0  ;;  %1119 = vmatpush3.bf16.msra.mxu1 %v1262_v18 }
  0x1d   :  { %1120 = vmatprep.subr.bf16.mxu1 %v1328_v0 }
  0x1f   :  { %1101 = vmatpush3.bf16.msra.mxu0 %v1255_v12  ;;  %v365_v12 = vunpack.c.h.bf16 %v954_v57  ;;  %v1307_v57 = vld [vmem:[%s1661_s2 + $0x18] sm:$0xff]  }
  0x20   :  { %1126 = vmatprep.subr.bf16.mxu0 %v1328_v0  ;;  %1121 = vmatpush3.bf16.msra.mxu1 %v1263_v19 }
  0x21   :  { %1146 = vmatprep.subr.bf16.mxu1 %v1328_v0 }
  0x22   :  { %1103 = vmatmul.mubr.bf16.vlgmr.msra.gmra.mrb[0].mxu0 %v22_v13 }
  0x23   :  { %1142 = vmatprep.mubr.msk.bf16.mxu0 %vm1329_vm0, %v1328_v0  ;;  %1127 = vmatpush3.bf16.msra.mxu0 %v1264_v20 }
  0x24   :  { %1128 = vmatprep.subr.bf16.mxu0 %v1328_v0 }
  0x27   :  { %1129 = vmatpush3.bf16.msra.mxu0 %v1265_v21  ;;  %v1290_v21 = vld [vmem:[%s1661_s2 + $0x10] sm:$0xff]  }
  0x28   :  { %1130 = vmatprep.subr.bf16.mxu0 %v1328_v0 }
  0x2b   :  { %1131 = vmatpush3.bf16.msra.mxu0 %v1266_v32 }
  0x2c   :  { %1132 = vmatprep.subr.bf16.mxu0 %v1328_v0 }
  0x2f   :  { %1133 = vmatpush3.bf16.msra.mxu0 %v1267_v33 }
  0x30   :  { %1134 = vmatprep.subr.bf16.mxu0 %v1328_v0 }
  0x33   :  { %1135 = vmatpush3.bf16.msra.mxu0 %v1268_v34 }
  0x34   :  { %1136 = vmatprep.subr.bf16.mxu0 %v1328_v0 }
  0x37   :  { %1137 = vmatpush3.bf16.msra.mxu0 %v1269_v35 }
  0x38   :  { %1138 = vmatprep.subr.bf16.mxu0 %v1328_v0 }
  0x3b   :  { %1139 = vmatpush3.bf16.msra.mxu0 %v1270_v36 }
  0x3c   :  { %1140 = vmatprep.subr.bf16.mxu0 %v1328_v0 }
  0x3f   :  { %1141 = vmatpush3.bf16.msra.mxu0 %v1271_v37 }
  0x40   :  { %1166 = vmatprep.subr.bf16.mxu0 %v1328_v0 }
  0xf5   :  { %v123_v24 = vpop.f32.mrb[0].mxu0 }
  0xf6   :  { %v129_v25 = vadd.f32 %v123_v24, %v24_v23  ;;  %v1104_v26 = vpop.f32.mrb[1].mxu0  ;;  %v1292_v23 = vld [vmem:[%s1661_s2 + $0x20] sm:$0xff]   ;;  %v1293_v24 = vld [vmem:[%s1661_s2 + $0x28] sm:$0xff]  }
  0xf7   :  { %v126_v27 = vpop.f32.mrb[2].mxu0  ;;  %v1295_v26 = vld [vmem:[%s1661_s2 + $0x38] sm:$0xff]  }
  0xf8   :  { %1312 = vtanh.f32 %v129_v25  ;;  %v1105_v28 = vpop.f32.mrb[3].mxu0  ;;  %v1294_v25 = vld [vmem:[%s1661_s2 + $0x30] sm:$0xff]   ;;  %v1296_v27 = vld [vmem:[%s1661_s2] sm:$0xff]  }
  0xf9   :  { %v1297_v28 = vld [vmem:[%s1661_s2 + $0x8] sm:$0xff]  }
 0x102   :  { %v1313_v29 = vpop.eup %1312 }
 0x103   :  { %v131_v30 = vpack.c.bf16 %v1313_v29, %v1313_v29  ;;  %v974_v29 = vld [vmem:[%s1663_s0 + $0x10] sm:$0xff]  }
 0x105   :  { %132 = vst [vmem:[#allocation2] sm:$0xf] %v131_v30  ;;  %133 = vst [vmem:[%s1664_s3] sm:$0xf] %v131_v30  ;;  %v479_v30 = vunpack.c.l.bf16 %v974_v29 }
 0x10c   :  { %v134_v31 = vld [vmem:[#allocation2] sm:$0xf] }
 0x10d   :  { %1123 = vmatmul.mubr.bf16.vlgmr.msra.gmra.mrb[0].mxu1 %v134_v31 }
 0x10e   :  { %1162 = vmatprep.mubr.msk.bf16.mxu1 %vm1329_vm0, %v1328_v0  ;;  %1147 = vmatpush3.bf16.msra.mxu1 %v1272_v38 }
 0x10f   :  { %1148 = vmatprep.subr.bf16.mxu1 %v1328_v0 }
 0x112   :  { %1149 = vmatpush3.bf16.msra.mxu1 %v1273_v39  ;;  %v1298_v39 = vld [vmem:[%s1661_s2 + $0x10] sm:$0xff]  }
 0x113   :  { %1150 = vmatprep.subr.bf16.mxu1 %v1328_v0 }
 0x116   :  { %1151 = vmatpush3.bf16.msra.mxu1 %v1274_v49 }
 0x117   :  { %1152 = vmatprep.subr.bf16.mxu1 %v1328_v0 }
 0x11a   :  { %1153 = vmatpush3.bf16.msra.mxu1 %v1275_v50 }
 0x11b   :  { %1154 = vmatprep.subr.bf16.mxu1 %v1328_v0 }
 0x11e   :  { %1155 = vmatpush3.bf16.msra.mxu1 %v1276_v51 }
 0x11f   :  { %1156 = vmatprep.subr.bf16.mxu1 %v1328_v0 }
 0x122   :  { %1157 = vmatpush3.bf16.msra.mxu1 %v1277_v52 }
 0x123   :  { %1158 = vmatprep.subr.bf16.mxu1 %v1328_v0 }
 0x126   :  { %1159 = vmatpush3.bf16.msra.mxu1 %v1278_v53 }
 0x127   :  { %1160 = vmatprep.subr.bf16.mxu1 %v1328_v0 }
 0x12a   :  { %1161 = vmatpush3.bf16.msra.mxu1 %v1279_v54 }
 0x12b   :  { %1186 = vmatprep.subr.bf16.mxu1 %v1328_v0 }
 0x1e0   :  { %v236_v41 = vpop.f32.mrb[0].mxu1 }
 0x1e1   :  { %v242_v42 = vadd.f32 %v236_v41, %v137_v40  ;;  %v1124_v43 = vpop.f32.mrb[1].mxu1  ;;  %v1299_v40 = vld [vmem:[%s1661_s2 + $0x18] sm:$0xff]   ;;  %v1300_v41 = vld [vmem:[%s1661_s2 + $0x20] sm:$0xff]  }
 0x1e2   :  { %v239_v44 = vpop.f32.mrb[2].mxu1  ;;  %v1302_v43 = vld [vmem:[%s1661_s2 + $0x30] sm:$0xff]  }
 0x1e3   :  { %1314 = vtanh.f32 %v242_v42  ;;  %v1125_v45 = vpop.f32.mrb[3].mxu1  ;;  %v1301_v42 = vld [vmem:[%s1661_s2 + $0x28] sm:$0xff]   ;;  %v1303_v44 = vld [vmem:[%s1661_s2 + $0x38] sm:$0xff]  }
 0x1e4   :  { %v1304_v45 = vld [vmem:[%s1661_s2] sm:$0xff]  }
 0x1ed   :  { %v1315_v46 = vpop.eup %1314 }
 0x1ee   :  { %v244_v47 = vpack.c.bf16 %v1315_v46, %v1315_v46  ;;  %v1305_v46 = vld [vmem:[%s1661_s2 + $0x8] sm:$0xff]  }
 0x1f0   :  { %245 = vst [vmem:[#allocation2] sm:$0xf] %v244_v47  ;;  %953 = vst [vmem:[%s1664_s3 + $0x4] sm:$0xf] %v244_v47  ;;  %v593_v47 = vunpack.c.h.bf16 %v974_v29 }
 0x1f7   :  { %v248_v48 = vld [vmem:[#allocation2] sm:$0xf] }
 0x1f8   :  { %1143 = vmatmul.mubr.bf16.vlgmr.msra.gmra.mrb[4].mxu0 %v248_v48 }
 0x1f9   :  { %1182 = vmatprep.mubr.msk.bf16.mxu0 %vm1329_vm0, %v1328_v0  ;;  %1167 = vmatpush3.bf16.msra.mxu0 %v1280_v55 }
 0x1fa   :  { %1168 = vmatprep.subr.bf16.mxu0 %v1328_v0 }
 0x1fd   :  { %1169 = vmatpush3.bf16.msra.mxu0 %v1281_v56  ;;  %v1306_v56 = vld [vmem:[%s1661_s2 + $0x10] sm:$0xff]  }
 0x1fe   :  { %1170 = vmatprep.subr.bf16.mxu0 %v1328_v0 }
 0x201   :  { %1171 = vmatpush3.bf16.msra.mxu0 %v1282_v4 }
 0x202   :  { %1172 = vmatprep.subr.bf16.mxu0 %v1328_v0 }
 0x205   :  { %1173 = vmatpush3.bf16.msra.mxu0 %v1283_v5 }
 0x206   :  { %1174 = vmatprep.subr.bf16.mxu0 %v1328_v0 }
 0x209   :  { %1175 = vmatpush3.bf16.msra.mxu0 %v1284_v6 }
 0x20a   :  { %1176 = vmatprep.subr.bf16.mxu0 %v1328_v0 }
 0x20d   :  { %1177 = vmatpush3.bf16.msra.mxu0 %v1285_v7 }
 0x20e   :  { %1178 = vmatprep.subr.bf16.mxu0 %v1328_v0 }
 0x211   :  { %1179 = vmatpush3.bf16.msra.mxu0 %v1286_v8 }
 0x212   :  { %1180 = vmatprep.subr.bf16.mxu0 %v1328_v0 }
 0x215   :  { %1181 = vmatpush3.bf16.msra.mxu0 %v1287_v9 }
 0x216   :  { %1206 = vmatprep.subr.bf16.mxu0 %v1328_v0 }
 0x2cb   :  { %v350_v59 = vpop.f32.mrb[4].mxu0 }
 0x2cc   :  { %v356_v60 = vadd.f32 %v350_v59, %v251_v58  ;;  %v1144_v61 = vpop.f32.mrb[5].mxu0  ;;  %v1308_v58 = vld [vmem:[%s1661_s2 + $0x20] sm:$0xff]   ;;  %v1309_v59 = vld [vmem:[%s1661_s2 + $0x28] sm:$0xff]  }
 0x2cd   :  { %v353_v62 = vpop.f32.mrb[6].mxu0  ;;  %v1311_v61 = vld [vmem:[%s1661_s2 + $0x38] sm:$0xff]  }
 0x2ce   :  { %1316 = vtanh.f32 %v356_v60  ;;  %v1145_v63 = vpop.f32.mrb[7].mxu0  ;;  %v1310_v60 = vld [vmem:[%s1661_s2 + $0x30] sm:$0xff]   ;;  %v994_v62 = vld [vmem:[%s1663_s0 + $0x18] sm:$0xff]  }
 0x2cf   :  { %v707_v63 = vunpack.c.l.bf16 %v994_v62  ;;  %v821_v8 = vunpack.c.h.bf16 %v994_v62 }
 0x2d8   :  { %v1317_v1 = vpop.eup %1316 }
 0x2d9   :  { %v358_v2 = vpack.c.bf16 %v1317_v1, %v1317_v1 }
 0x2db   :  { %359 = vst [vmem:[#allocation2] sm:$0xf] %v358_v2  ;;  %963 = vst [vmem:[%s1664_s3 + $0x8] sm:$0xf] %v358_v2 }
 0x2e2   :  { %v362_v3 = vld [vmem:[#allocation2] sm:$0xf] }
 0x2e3   :  { %1163 = vmatmul.mubr.bf16.vlgmr.msra.gmra.mrb[4].mxu1 %v362_v3 }
 0x2e4   :  { %1202 = vmatprep.mubr.msk.bf16.mxu1 %vm1329_vm0, %v1328_v0  ;;  %1187 = vmatpush3.bf16.msra.mxu1 %v1288_v10 }
 0x2e5   :  { %1188 = vmatprep.subr.bf16.mxu1 %v1328_v0 }
 0x2e8   :  { %1189 = vmatpush3.bf16.msra.mxu1 %v1289_v11 }
 0x2e9   :  { %1190 = vmatprep.subr.bf16.mxu1 %v1328_v0 }
 0x2ec   :  { %1191 = vmatpush3.bf16.msra.mxu1 %v1290_v21 }
 0x2ed   :  { %1192 = vmatprep.subr.bf16.mxu1 %v1328_v0 }
 0x2f0   :  { %1193 = vmatpush3.bf16.msra.mxu1 %v1291_v22 }
 0x2f1   :  { %1194 = vmatprep.subr.bf16.mxu1 %v1328_v0 }
 0x2f4   :  { %1195 = vmatpush3.bf16.msra.mxu1 %v1292_v23 }
 0x2f5   :  { %1196 = vmatprep.subr.bf16.mxu1 %v1328_v0 }
 0x2f8   :  { %1197 = vmatpush3.bf16.msra.mxu1 %v1293_v24 }
 0x2f9   :  { %1198 = vmatprep.subr.bf16.mxu1 %v1328_v0 }
 0x2fc   :  { %1199 = vmatpush3.bf16.msra.mxu1 %v1294_v25 }
 0x2fd   :  { %1200 = vmatprep.subr.bf16.mxu1 %v1328_v0 }
 0x300   :  { %1201 = vmatpush3.bf16.msra.mxu1 %v1295_v26 }
 0x301   :  { %1226 = vmatprep.subr.bf16.mxu1 %v1328_v0 }
 0x3b6   :  { %v464_v13 = vpop.f32.mrb[4].mxu1 }
 0x3b7   :  { %v470_v14 = vadd.f32 %v464_v13, %v365_v12  ;;  %v1164_v15 = vpop.f32.mrb[5].mxu1 }
 0x3b8   :  { %v467_v16 = vpop.f32.mrb[6].mxu1 }
 0x3b9   :  { %1318 = vtanh.f32 %v470_v14  ;;  %v1165_v17 = vpop.f32.mrb[7].mxu1 }
 0x3c3   :  { %v1319_v18 = vpop.eup %1318 }
 0x3c4   :  { %v472_v19 = vpack.c.bf16 %v1319_v18, %v1319_v18 }
 0x3c6   :  { %473 = vst [vmem:[#allocation2] sm:$0xf] %v472_v19  ;;  %973 = vst [vmem:[%s1664_s3 + $0xc] sm:$0xf] %v472_v19 }
 0x3cd   :  { %v476_v20 = vld [vmem:[#allocation2] sm:$0xf] }
 0x3ce   :  { %1183 = vmatmul.mubr.bf16.vlgmr.msra.gmra.mrb[8].mxu0 %v476_v20 }
 0x3cf   :  { %1222 = vmatprep.mubr.msk.bf16.mxu0 %vm1329_vm0, %v1328_v0  ;;  %1207 = vmatpush3.bf16.msra.mxu0 %v1296_v27 }
 0x3d0   :  { %1208 = vmatprep.subr.bf16.mxu0 %v1328_v0 }
 0x3d3   :  { %1209 = vmatpush3.bf16.msra.mxu0 %v1297_v28 }
 0x3d4   :  { %1210 = vmatprep.subr.bf16.mxu0 %v1328_v0 }
 0x3d7   :  { %1211 = vmatpush3.bf16.msra.mxu0 %v1298_v39 }
 0x3d8   :  { %1212 = vmatprep.subr.bf16.mxu0 %v1328_v0 }
 0x3db   :  { %1213 = vmatpush3.bf16.msra.mxu0 %v1299_v40 }
 0x3dc   :  { %1214 = vmatprep.subr.bf16.mxu0 %v1328_v0 }
 0x3df   :  { %1215 = vmatpush3.bf16.msra.mxu0 %v1300_v41 }
 0x3e0   :  { %1216 = vmatprep.subr.bf16.mxu0 %v1328_v0 }
 0x3e3   :  { %1217 = vmatpush3.bf16.msra.mxu0 %v1301_v42 }
 0x3e4   :  { %1218 = vmatprep.subr.bf16.mxu0 %v1328_v0 }
 0x3e7   :  { %1219 = vmatpush3.bf16.msra.mxu0 %v1302_v43 }
 0x3e8   :  { %1220 = vmatprep.subr.bf16.mxu0 %v1328_v0 }
 0x3eb   :  { %1221 = vmatpush3.bf16.msra.mxu0 %v1303_v44 }
 0x4a1   :  { %v578_v31 = vpop.f32.mrb[8].mxu0 }
 0x4a2   :  { %v584_v32 = vadd.f32 %v578_v31, %v479_v30  ;;  %v1184_v33 = vpop.f32.mrb[9].mxu0 }
 0x4a3   :  { %v581_v34 = vpop.f32.mrb[10].mxu0 }
 0x4a4   :  { %1320 = vtanh.f32 %v584_v32  ;;  %v1185_v35 = vpop.f32.mrb[11].mxu0 }
 0x4ae   :  { %v1321_v36 = vpop.eup %1320 }
 0x4af   :  { %v586_v37 = vpack.c.bf16 %v1321_v36, %v1321_v36 }
 0x4b1   :  { %587 = vst [vmem:[#allocation2] sm:$0xf] %v586_v37  ;;  %983 = vst [vmem:[%s1664_s3 + $0x10] sm:$0xf] %v586_v37 }
 0x4b8   :  { %v590_v38 = vld [vmem:[#allocation2] sm:$0xf] }
 0x4b9   :  { %1203 = vmatmul.mubr.bf16.vlgmr.msra.gmra.mrb[8].mxu1 %v590_v38 }
 0x4ba   :  { %1242 = vmatprep.mubr.msk.bf16.mxu1 %vm1329_vm0, %v1328_v0  ;;  %1227 = vmatpush3.bf16.msra.mxu1 %v1304_v45 }
 0x4bb   :  { %1228 = vmatprep.subr.bf16.mxu1 %v1328_v0 }
 0x4be   :  { %1229 = vmatpush3.bf16.msra.mxu1 %v1305_v46 }
 0x4bf   :  { %1230 = vmatprep.subr.bf16.mxu1 %v1328_v0 }
 0x4c2   :  { %1231 = vmatpush3.bf16.msra.mxu1 %v1306_v56 }
 0x4c3   :  { %1232 = vmatprep.subr.bf16.mxu1 %v1328_v0 }
 0x4c6   :  { %1233 = vmatpush3.bf16.msra.mxu1 %v1307_v57 }
 0x4c7   :  { %1234 = vmatprep.subr.bf16.mxu1 %v1328_v0 }
 0x4ca   :  { %1235 = vmatpush3.bf16.msra.mxu1 %v1308_v58 }
 0x4cb   :  { %1236 = vmatprep.subr.bf16.mxu1 %v1328_v0 }
 0x4ce   :  { %1237 = vmatpush3.bf16.msra.mxu1 %v1309_v59 }
 0x4cf   :  { %1238 = vmatprep.subr.bf16.mxu1 %v1328_v0 }
 0x4d2   :  { %1239 = vmatpush3.bf16.msra.mxu1 %v1310_v60 }
 0x4d3   :  { %1240 = vmatprep.subr.bf16.mxu1 %v1328_v0 }
 0x4d6   :  { %1241 = vmatpush3.bf16.msra.mxu1 %v1311_v61 }
 0x58c   :  { %v692_v48 = vpop.f32.mrb[8].mxu1 }
 0x58d   :  { %v698_v49 = vadd.f32 %v692_v48, %v593_v47  ;;  %v1204_v50 = vpop.f32.mrb[9].mxu1 }
 0x58e   :  { %v695_v51 = vpop.f32.mrb[10].mxu1 }
 0x58f   :  { %1322 = vtanh.f32 %v698_v49  ;;  %v1205_v52 = vpop.f32.mrb[11].mxu1 }
 0x599   :  { %v1323_v53 = vpop.eup %1322 }
 0x59a   :  { %v700_v54 = vpack.c.bf16 %v1323_v53, %v1323_v53 }
 0x59c   :  { %993 = vst [vmem:[%s1664_s3 + $0x14] sm:$0xf] %v700_v54  ;;  %701 = vst [vmem:[#allocation2] sm:$0xf] %v700_v54 }
 0x5a3   :  { %v704_v55 = vld [vmem:[#allocation2] sm:$0xf] }
 0x5a4   :  { %1223 = vmatmul.mubr.bf16.vlgmr.msra.gmra.mrb[12].mxu0 %v704_v55 }
 0x677   :  { %v806_v1 = vpop.f32.mrb[12].mxu0 }
 0x678   :  { %v812_v2 = vadd.f32 %v806_v1, %v707_v63  ;;  %v1224_v3 = vpop.f32.mrb[13].mxu0 }
 0x679   :  { %v809_v4 = vpop.f32.mrb[14].mxu0 }
 0x67a   :  { %1324 = vtanh.f32 %v812_v2  ;;  %v1225_v5 = vpop.f32.mrb[15].mxu0 }
 0x684   :  { %v1325_v6 = vpop.eup %1324 }
 0x685   :  { %v814_v7 = vpack.c.bf16 %v1325_v6, %v1325_v6 }
 0x687   :  { %1003 = vst [vmem:[%s1664_s3 + $0x18] sm:$0xf] %v814_v7  ;;  %815 = vst [vmem:[#allocation2] sm:$0xf] %v814_v7 }
 0x68e   :  { %v818_v0 = vld [vmem:[#allocation2] sm:$0xf] }
 0x68f   :  { %1243 = vmatmul.mubr.bf16.vlgmr.msra.gmra.mrb[12].mxu1 %v818_v0 }
 0x762   :  { %v920_v9 = vpop.f32.mrb[12].mxu1 }
 0x763   :  { %v926_v10 = vadd.f32 %v920_v9, %v821_v8  ;;  %v1244_v11 = vpop.f32.mrb[13].mxu1 }
 0x764   :  { %v923_v12 = vpop.f32.mrb[14].mxu1 }
 0x765   :  { %1326 = vtanh.f32 %v926_v10  ;;  %v1245_v13 = vpop.f32.mrb[15].mxu1 }
 0x76f   :  { %v1327_v14 = vpop.eup %1326 }
 0x770   :  { %v928_v15 = vpack.c.bf16 %v1327_v14, %v1327_v14 }
 0x772   :  { %929 = vst [vmem:[#allocation2] sm:$0xf] %v928_v15  ;;  %1013 = vst [vmem:[%s1664_s3 + $0x1c] sm:$0xf] %v928_v15 }

</bundles_post_ra>
